<compile_context>
chip_gen: v7x
topology: tpu7x:2x2x1
jax: 0.10.0
libtpu: 0.0.40
codegen_flags: <defaults>
</compile_context>

<pallas_src>
import functools

import jax
import jax.numpy as jnp
from jax.experimental import pallas as pl
from jax.experimental.pallas import tpu as pltpu

EPS = 1e-5            # PyTorch BatchNorm1d default eps
IN_F = 28 * 28        # 784
H1, H1P = 300, 384    # fc1 out, lane-padded
H2, H2P = 100, 128    # fc2 out, lane-padded
OUT, OUTP = 10, 128   # fc3 out, lane-padded


def _round_up(n, m):
    return (n + m - 1) // m * m


def _pad2(a, rows, cols, dtype=None):
    """Zero-pad a 2D array to (rows, cols), optionally casting."""
    r, c = a.shape
    a = jnp.pad(a, ((0, rows - r), (0, cols - c)))
    return a.astype(dtype) if dtype is not None else a


def _lenet_noisy_kernel(
    x_ref,                       # (Bp, 784) bf16
    w1_ref, b1_ref,              # (784, 384) bf16, (1, 384) f32
    g1_ref, be1_ref,             # (1, 384) f32   (gamma padded with 0)
    s1_ref, m1_ref,              # (Bp, 384) f32  AddNoise1 scale/shift
    w2_ref, b2_ref,              # (384, 128) bf16, (1, 128) f32
    g2_ref, be2_ref,             # (1, 128) f32
    s2_ref, m2_ref,              # (Bp, 128) f32  AddNoise2 scale/shift
    w3_ref, b3_ref,              # (128, 128) bf16, (1, 128) f32
    out_ref,                     # (Bp, 128) f32  (real logits in [:, :10])
    *, true_batch,
):
    bp = out_ref.shape[0]
    inv_n = 1.0 / float(true_batch)
    # 1.0 for real batch rows, 0.0 for sublane-padding rows.
    row_ids = jax.lax.broadcasted_iota(jnp.int32, (bp, 1), 0)
    row_mask = (row_ids < true_batch).astype(jnp.float32)

    def bn_noise(h, g_ref, be_ref, s_ref, m_ref):
        # Fused single-pass, masked batch statistics (training-mode / biased),
        # divided by the true batch size so padded rows don't count.
        hm = h * row_mask
        mean = jnp.sum(hm, axis=0, keepdims=True) * inv_n
        ex2 = jnp.sum(hm * h, axis=0, keepdims=True) * inv_n
        var = ex2 - mean * mean
        a = g_ref[...] * jax.lax.rsqrt(var + EPS)        # (1, H)
        c = be_ref[...] - a * mean                       # (1, H)
        # BatchNorm affine fused with AddNoise:  s * (a*h + c) + m
        return s_ref[...] * (a * h + c) + m_ref[...]

    # fc1 (bf16 MXU, f32 accumulate) + relu
    h = jnp.dot(x_ref[...], w1_ref[...], preferred_element_type=jnp.float32)
    h = jnp.maximum(h + b1_ref[...], 0.0)
    h = bn_noise(h, g1_ref, be1_ref, s1_ref, m1_ref)

    # fc2 + relu
    h = jnp.dot(h.astype(jnp.bfloat16), w2_ref[...],
                preferred_element_type=jnp.float32)
    h = jnp.maximum(h + b2_ref[...], 0.0)
    h = bn_noise(h, g2_ref, be2_ref, s2_ref, m2_ref)

    # fc3 -> lane-dense (Bp, 128) output
    out_ref[...] = (
        jnp.dot(h.astype(jnp.bfloat16), w3_ref[...],
                preferred_element_type=jnp.float32) + b3_ref[...]
    )


def lenet_noisy_forward(x, params, noise):
    """x: (B, 1, 28, 28) or (B, 784). Returns (B, 10) float32 logits."""
    B = x.shape[0]
    Bp = _round_up(max(B, 8), 8)

    x2d = x.reshape(B, IN_F).astype(jnp.float32)
    x_p = _pad2(x2d, Bp, IN_F, jnp.bfloat16)

    (w1, b1, g1, be1, w2, b2, g2, be2, w3, b3) = params
    (s1, m1, s2, m2) = noise

    args = (
        x_p,
        _pad2(w1, IN_F, H1P, jnp.bfloat16), _pad2(b1, 1, H1P),
        _pad2(g1, 1, H1P), _pad2(be1, 1, H1P),
        _pad2(s1, Bp, H1P), _pad2(m1, Bp, H1P),
        _pad2(w2, H1P, H2P, jnp.bfloat16), _pad2(b2, 1, H2P),
        _pad2(g2, 1, H2P), _pad2(be2, 1, H2P),
        _pad2(s2, Bp, H2P), _pad2(m2, Bp, H2P),
        _pad2(w3, H2P, OUTP, jnp.bfloat16), _pad2(b3, 1, OUTP),
    )

    vmem = pl.BlockSpec(memory_space=pltpu.MemorySpace.VMEM)
    out = pl.pallas_call(
        functools.partial(_lenet_noisy_kernel, true_batch=B),
        out_shape=jax.ShapeDtypeStruct((Bp, OUTP), jnp.float32),
        in_specs=[vmem] * len(args),
        out_specs=vmem,
        compiler_params=pltpu.CompilerParams(vmem_limit_bytes=64 << 20),
    )(*args)
    return out[:B, :OUT]


def init_params(key):
    """Deterministic parameter init matching the module's shapes (in, out)."""
    ks = jax.random.split(key, 6)
    w1 = jax.random.normal(ks[0], (IN_F, H1), jnp.float32) * 0.05
    b1 = jax.random.normal(ks[1], (1, H1), jnp.float32) * 0.05
    w2 = jax.random.normal(ks[2], (H1, H2), jnp.float32) * 0.05
    b2 = jax.random.normal(ks[3], (1, H2), jnp.float32) * 0.05
    w3 = jax.random.normal(ks[4], (H2, OUT), jnp.float32) * 0.05
    b3 = jax.random.normal(ks[5], (1, OUT), jnp.float32) * 0.05
    # BatchNorm1d affine params (PyTorch default init: gamma=1, beta=0)
    g1 = jnp.ones((1, H1), jnp.float32)
    be1 = jnp.zeros((1, H1), jnp.float32)
    g2 = jnp.ones((1, H2), jnp.float32)
    be2 = jnp.zeros((1, H2), jnp.float32)
    return (w1, b1, g1, be1, w2, b2, g2, be2, w3, b3)


def make_addnoise_mats(key, batch, num_entries, n_mu, n_sigma, r_mu, r_sigma):
    """Deterministic JAX equivalent of AddNoise's numpy sampling.

    mu_j   ~ U(-n_mu, n_mu)        per feature
    sig_j  ~ U(1, n_sigma)         per feature
    m[b,j] ~ U(mu_j - r_mu, mu_j + r_mu)
    s[b,j] ~ N(sig_j, r_sigma)
    forward: s * x + m
    """
    k_mu, k_sig, k_m, k_s = jax.random.split(key, 4)
    mu = jax.random.uniform(k_mu, (num_entries,), minval=-n_mu, maxval=n_mu)
    sigma = jax.random.uniform(k_sig, (num_entries,), minval=1.0, maxval=n_sigma)
    m = mu[None, :] + jax.random.uniform(
        k_m, (batch, num_entries), minval=-r_mu, maxval=r_mu
    )
    s = sigma[None, :] + r_sigma * jax.random.normal(k_s, (batch, num_entries))
    return s.astype(jnp.float32), m.astype(jnp.float32)


if __name__ == "__main__":
    B = 4
    root = jax.random.PRNGKey(0)
    k_x, k_p, k_n1, k_n2 = jax.random.split(root, 4)

    x = jax.random.normal(k_x, (B, 1, 28, 28), jnp.float32)
    params = init_params(k_p)

    s1, m1 = make_addnoise_mats(k_n1, B, H1, 0.5, 1.25, 0.1, 0.1)
    s2, m2 = make_addnoise_mats(k_n2, B, H2, 0.5, 1.25, 0.1, 0.1)
    noise = (s1, m1, s2, m2)

    out = lenet_noisy_forward(x, params, noise)
    jax.block_until_ready(out)
    assert out.shape == (B, OUT) and out.dtype == jnp.float32
    assert bool(jnp.all(jnp.isfinite(out)))
    print("KERNEL_OK")
</pallas_src>

<mosaic_0001>
module attributes {stable_mosaic.version = 11 : i64} {
  func.func @_lenet_noisy_kernel(%arg0: memref<8x784xbf16, #tpu.memory_space<vmem>>, %arg1: memref<784x384xbf16, #tpu.memory_space<vmem>>, %arg2: memref<1x384xf32, #tpu.memory_space<vmem>>, %arg3: memref<1x384xf32, #tpu.memory_space<vmem>>, %arg4: memref<1x384xf32, #tpu.memory_space<vmem>>, %arg5: memref<8x384xf32, #tpu.memory_space<vmem>>, %arg6: memref<8x384xf32, #tpu.memory_space<vmem>>, %arg7: memref<384x128xbf16, #tpu.memory_space<vmem>>, %arg8: memref<1x128xf32, #tpu.memory_space<vmem>>, %arg9: memref<1x128xf32, #tpu.memory_space<vmem>>, %arg10: memref<1x128xf32, #tpu.memory_space<vmem>>, %arg11: memref<8x128xf32, #tpu.memory_space<vmem>>, %arg12: memref<8x128xf32, #tpu.memory_space<vmem>>, %arg13: memref<128x128xbf16, #tpu.memory_space<vmem>>, %arg14: memref<1x128xf32, #tpu.memory_space<vmem>>, %arg15: memref<8x128xf32, #tpu.memory_space<vmem>>) attributes {dimension_semantics = [], scalar_prefetch = 0 : i64, scratch_operands = 0 : i64, tpu.core_type = #tpu.core_type<tc>} {
    %0 = tpu.iota {dimensions = array<i32: 0>} : vector<8x1xi32>
    %c4_i32 = arith.constant 4 : i32
    %1 = vector.broadcast %c4_i32 : i32 to vector<8x1xi32>
    %2 = arith.cmpi slt, %0, %1 : vector<8x1xi32>
    %3 = arith.extui %2 : vector<8x1xi1> to vector<8x1xi32>
    %4 = arith.sitofp %3 : vector<8x1xi32> to vector<8x1xf32>
    %c0 = arith.constant 0 : index
    %c0_0 = arith.constant 0 : index
    %5 = vector.load %arg0[%c0, %c0_0] : memref<8x784xbf16, #tpu.memory_space<vmem>>, vector<8x784xbf16>
    %c0_1 = arith.constant 0 : index
    %c0_2 = arith.constant 0 : index
    %6 = vector.load %arg1[%c0_1, %c0_2] : memref<784x384xbf16, #tpu.memory_space<vmem>>, vector<784x384xbf16>
    %cst = arith.constant dense<0.000000e+00> : vector<8x384xf32>
    %7 = tpu.matmul %5, %6, %cst {dimension_numbers = #tpu.dot_dimension_numbers<[1], [0], [0], [1], [0, 0, 1, 1], [], []>} : vector<8x784xbf16>, vector<784x384xbf16>, vector<8x384xf32> -> vector<8x384xf32>
    %c0_3 = arith.constant 0 : index
    %c0_4 = arith.constant 0 : index
    %8 = vector.load %arg2[%c0_3, %c0_4] : memref<1x384xf32, #tpu.memory_space<vmem>>, vector<1x384xf32>
    %9 = vector.broadcast %8 : vector<1x384xf32> to vector<8x384xf32>
    %10 = arith.addf %7, %9 : vector<8x384xf32>
    %cst_5 = arith.constant 0.000000e+00 : f32
    %11 = vector.broadcast %cst_5 : f32 to vector<8x384xf32>
    %12 = arith.maximumf %10, %11 : vector<8x384xf32>
    %13 = vector.broadcast %4 : vector<8x1xf32> to vector<8x384xf32>
    %14 = arith.mulf %12, %13 : vector<8x384xf32>
    %cst_6 = arith.constant dense<0.000000e+00> : vector<384xf32>
    %15 = vector.multi_reduction <add>, %14, %cst_6 [0] : vector<8x384xf32> to vector<384xf32>
    %16 = vector.shape_cast %15 : vector<384xf32> to vector<1x384xf32>
    %cst_7 = arith.constant 2.500000e-01 : f32
    %17 = vector.broadcast %cst_7 : f32 to vector<1x384xf32>
    %18 = arith.mulf %16, %17 : vector<1x384xf32>
    %19 = arith.mulf %14, %12 : vector<8x384xf32>
    %cst_8 = arith.constant dense<0.000000e+00> : vector<384xf32>
    %20 = vector.multi_reduction <add>, %19, %cst_8 [0] : vector<8x384xf32> to vector<384xf32>
    %21 = vector.shape_cast %20 : vector<384xf32> to vector<1x384xf32>
    %cst_9 = arith.constant 2.500000e-01 : f32
    %22 = vector.broadcast %cst_9 : f32 to vector<1x384xf32>
    %23 = arith.mulf %21, %22 : vector<1x384xf32>
    %24 = arith.mulf %18, %18 : vector<1x384xf32>
    %25 = arith.subf %23, %24 : vector<1x384xf32>
    %c0_10 = arith.constant 0 : index
    %c0_11 = arith.constant 0 : index
    %26 = vector.load %arg3[%c0_10, %c0_11] : memref<1x384xf32, #tpu.memory_space<vmem>>, vector<1x384xf32>
    %cst_12 = arith.constant 9.99999974E-6 : f32
    %27 = vector.broadcast %cst_12 : f32 to vector<1x384xf32>
    %28 = arith.addf %25, %27 : vector<1x384xf32>
    %29 = math.rsqrt %28 : vector<1x384xf32>
    %30 = arith.mulf %26, %29 : vector<1x384xf32>
    %c0_13 = arith.constant 0 : index
    %c0_14 = arith.constant 0 : index
    %31 = vector.load %arg4[%c0_13, %c0_14] : memref<1x384xf32, #tpu.memory_space<vmem>>, vector<1x384xf32>
    %32 = arith.mulf %30, %18 : vector<1x384xf32>
    %33 = arith.subf %31, %32 : vector<1x384xf32>
    %c0_15 = arith.constant 0 : index
    %c0_16 = arith.constant 0 : index
    %34 = vector.load %arg5[%c0_15, %c0_16] : memref<8x384xf32, #tpu.memory_space<vmem>>, vector<8x384xf32>
    %35 = vector.broadcast %30 : vector<1x384xf32> to vector<8x384xf32>
    %36 = arith.mulf %35, %12 : vector<8x384xf32>
    %37 = vector.broadcast %33 : vector<1x384xf32> to vector<8x384xf32>
    %38 = arith.addf %36, %37 : vector<8x384xf32>
    %39 = arith.mulf %34, %38 : vector<8x384xf32>
    %c0_17 = arith.constant 0 : index
    %c0_18 = arith.constant 0 : index
    %40 = vector.load %arg6[%c0_17, %c0_18] : memref<8x384xf32, #tpu.memory_space<vmem>>, vector<8x384xf32>
    %41 = arith.addf %39, %40 : vector<8x384xf32>
    %42 = arith.truncf %41 : vector<8x384xf32> to vector<8x384xbf16>
    %c0_19 = arith.constant 0 : index
    %c0_20 = arith.constant 0 : index
    %43 = vector.load %arg7[%c0_19, %c0_20] : memref<384x128xbf16, #tpu.memory_space<vmem>>, vector<384x128xbf16>
    %cst_21 = arith.constant dense<0.000000e+00> : vector<8x128xf32>
    %44 = tpu.matmul %42, %43, %cst_21 {dimension_numbers = #tpu.dot_dimension_numbers<[1], [0], [0], [1], [0, 0, 1, 1], [], []>} : vector<8x384xbf16>, vector<384x128xbf16>, vector<8x128xf32> -> vector<8x128xf32>
    %c0_22 = arith.constant 0 : index
    %c0_23 = arith.constant 0 : index
    %45 = vector.load %arg8[%c0_22, %c0_23] : memref<1x128xf32, #tpu.memory_space<vmem>>, vector<1x128xf32>
    %46 = vector.broadcast %45 : vector<1x128xf32> to vector<8x128xf32>
    %47 = arith.addf %44, %46 : vector<8x128xf32>
    %cst_24 = arith.constant 0.000000e+00 : f32
    %48 = vector.broadcast %cst_24 : f32 to vector<8x128xf32>
    %49 = arith.maximumf %47, %48 : vector<8x128xf32>
    %50 = vector.broadcast %4 : vector<8x1xf32> to vector<8x128xf32>
    %51 = arith.mulf %49, %50 : vector<8x128xf32>
    %cst_25 = arith.constant dense<0.000000e+00> : vector<128xf32>
    %52 = vector.multi_reduction <add>, %51, %cst_25 [0] : vector<8x128xf32> to vector<128xf32>
    %53 = vector.shape_cast %52 : vector<128xf32> to vector<1x128xf32>
    %cst_26 = arith.constant 2.500000e-01 : f32
    %54 = vector.broadcast %cst_26 : f32 to vector<1x128xf32>
    %55 = arith.mulf %53, %54 : vector<1x128xf32>
    %56 = arith.mulf %51, %49 : vector<8x128xf32>
    %cst_27 = arith.constant dense<0.000000e+00> : vector<128xf32>
    %57 = vector.multi_reduction <add>, %56, %cst_27 [0] : vector<8x128xf32> to vector<128xf32>
    %58 = vector.shape_cast %57 : vector<128xf32> to vector<1x128xf32>
    %cst_28 = arith.constant 2.500000e-01 : f32
    %59 = vector.broadcast %cst_28 : f32 to vector<1x128xf32>
    %60 = arith.mulf %58, %59 : vector<1x128xf32>
    %61 = arith.mulf %55, %55 : vector<1x128xf32>
    %62 = arith.subf %60, %61 : vector<1x128xf32>
    %c0_29 = arith.constant 0 : index
    %c0_30 = arith.constant 0 : index
    %63 = vector.load %arg9[%c0_29, %c0_30] : memref<1x128xf32, #tpu.memory_space<vmem>>, vector<1x128xf32>
    %cst_31 = arith.constant 9.99999974E-6 : f32
    %64 = vector.broadcast %cst_31 : f32 to vector<1x128xf32>
    %65 = arith.addf %62, %64 : vector<1x128xf32>
    %66 = math.rsqrt %65 : vector<1x128xf32>
    %67 = arith.mulf %63, %66 : vector<1x128xf32>
    %c0_32 = arith.constant 0 : index
    %c0_33 = arith.constant 0 : index
    %68 = vector.load %arg10[%c0_32, %c0_33] : memref<1x128xf32, #tpu.memory_space<vmem>>, vector<1x128xf32>
    %69 = arith.mulf %67, %55 : vector<1x128xf32>
    %70 = arith.subf %68, %69 : vector<1x128xf32>
    %c0_34 = arith.constant 0 : index
    %c0_35 = arith.constant 0 : index
    %71 = vector.load %arg11[%c0_34, %c0_35] : memref<8x128xf32, #tpu.memory_space<vmem>>, vector<8x128xf32>
    %72 = vector.broadcast %67 : vector<1x128xf32> to vector<8x128xf32>
    %73 = arith.mulf %72, %49 : vector<8x128xf32>
    %74 = vector.broadcast %70 : vector<1x128xf32> to vector<8x128xf32>
    %75 = arith.addf %73, %74 : vector<8x128xf32>
    %76 = arith.mulf %71, %75 : vector<8x128xf32>
    %c0_36 = arith.constant 0 : index
    %c0_37 = arith.constant 0 : index
    %77 = vector.load %arg12[%c0_36, %c0_37] : memref<8x128xf32, #tpu.memory_space<vmem>>, vector<8x128xf32>
    %78 = arith.addf %76, %77 : vector<8x128xf32>
    %79 = arith.truncf %78 : vector<8x128xf32> to vector<8x128xbf16>
    %c0_38 = arith.constant 0 : index
    %c0_39 = arith.constant 0 : index
    %80 = vector.load %arg13[%c0_38, %c0_39] : memref<128x128xbf16, #tpu.memory_space<vmem>>, vector<128x128xbf16>
    %cst_40 = arith.constant dense<0.000000e+00> : vector<8x128xf32>
    %81 = tpu.matmul %79, %80, %cst_40 {dimension_numbers = #tpu.dot_dimension_numbers<[1], [0], [0], [1], [0, 0, 1, 1], [], []>} : vector<8x128xbf16>, vector<128x128xbf16>, vector<8x128xf32> -> vector<8x128xf32>
    %c0_41 = arith.constant 0 : index
    %c0_42 = arith.constant 0 : index
    %82 = vector.load %arg14[%c0_41, %c0_42] : memref<1x128xf32, #tpu.memory_space<vmem>>, vector<1x128xf32>
    %83 = vector.broadcast %82 : vector<1x128xf32> to vector<8x128xf32>
    %84 = arith.addf %81, %83 : vector<8x128xf32>
    %c0_43 = arith.constant 0 : index
    %c0_44 = arith.constant 0 : index
    %85 = vector.load %arg15[%c0_43, %c0_44] : memref<8x128xf32, #tpu.memory_space<vmem>>, vector<8x128xf32>
    tpu.vector_store %arg15[%c0_43, %c0_44], %84 {strides = array<i32>} : memref<8x128xf32, #tpu.memory_space<vmem>>, vector<8x128xf32>,
    return
  }
}

</mosaic_0001>

<bundles_post_ra>
// kernel: tpu_custom_call.1
= control target key start
LH: loop header
LB: loop body
LE: loop exit
PB: predicated region body
PF: predicated region fallthrough
CT: control target
= control target key end

     0   :  { %s3612_s0 = inlined_call_operand.hbm [shape: bf16[8,784], index: 0, kind: input, shape index: {}]   ;;  %s3613_s1 = inlined_call_operand.hbm [shape: bf16[784,384], index: 1, kind: input, shape index: {}]   ;;  %s3614_s2 = inlined_call_operand.hbm [shape: f32[1,384], index: 2, kind: input, shape index: {}]   ;;  %s3615_s3 = inlined_call_operand.hbm [shape: f32[1,384], index: 3, kind: input, shape index: {}]   ;;  %s3616_s4 = inlined_call_operand.hbm [shape: f32[1,384], index: 4, kind: input, shape index: {}]   ;;  %s3617_s5 = inlined_call_operand.hbm [shape: f32[8,384], index: 5, kind: input, shape index: {}]   ;;  %s3618_s6 = inlined_call_operand.hbm [shape: f32[8,384], index: 6, kind: input, shape index: {}]   ;;  %s3619_s7 = inlined_call_operand.hbm [shape: bf16[384,128], index: 7, kind: input, shape index: {}]   ;;  %s3620_s8 = inlined_call_operand.hbm [shape: f32[1,128], index: 8, kind: input, shape index: {}]   ;;  %s3621_s9 = inlined_call_operand.hbm [shape: f32[1,128], index: 9, kind: input, shape index: {}]   ;;  %s3622_s10 = inlined_call_operand.hbm [shape: f32[1,128], index: 10, kind: input, shape index: {}]   ;;  %s3623_s11 = inlined_call_operand.hbm [shape: f32[8,128], index: 11, kind: input, shape index: {}]   ;;  %s3624_s12 = inlined_call_operand.hbm [shape: f32[8,128], index: 12, kind: input, shape index: {}]   ;;  %s3625_s13 = inlined_call_operand.hbm [shape: bf16[128,128], index: 13, kind: input, shape index: {}]   ;;  %s3626_s14 = inlined_call_operand.hbm [shape: f32[1,128], index: 14, kind: input, shape index: {}]   ;;  %s3627_s15 = inlined_call_operand.hbm [shape: f32[8,128], index: 15, kind: output, shape index: {}]  }
   0x1   :  { %3629 = sst [smem:[#allocation36_spill]] %s3627_s15 }
   0x2   :  { %20 = vsyncpa [#allocation3], 0 }
   0x3   :  { %21 = vsyncpa [#allocation6], 0 }
   0x4   :  { %22 = vsyncpa [#allocation9], 0 }
   0x5   :  { %23 = vsyncpa [#allocation12], 0 }
   0x6   :  { %24 = vsyncpa [#allocation15], 0 }
   0x7   :  { %25 = vsyncpa [#allocation18], 0 }
   0x8   :  { %26 = vsyncpa [#allocation21], 0 }
   0x9   :  { %27 = vsyncpa [#allocation24], 0 }
   0xa   :  { %28 = vsyncpa [#allocation4], 0  ;;  %s3218_s18 = smov [#allocation5]   ;;  %s2848_s22 = scalar_lea.hbm %s3613_s1, 18816 }
   0xb   :  { %s44_s19 = sshll.u32 %s3218_s18, 4  ;;  %p2849_p0 = scmp.ne.s32.totalorder %s3613_s1, %s2848_s22  ;;  %s45_s19 = int_to_ptr.vmem [resolvable:$true] %s44_s19 }
   0xc   :  { %p2852_p1 = scmp.lt.u32.totalorder %s2848_s22, %s3613_s1 }
   0xe   :  { %p2854_p2 = pnand %p2852_p1, %p2849_p0 }
  0x10   :  { %2857 = shalt.err (!%p2854_p2)
}
  0x11   :  { %s2858_s27 = scalar_lea.vmem %s45_s19, 18816  ;;  %p2863_p4 = scmp.lt.s32.totalorder %s45_s19, %s45_s19 }
  0x12   :  { %p2859_p3 = scmp.ne.s32.totalorder %s45_s19, %s2858_s27  ;;  %p2864_p5 = scmp.lt.s32.totalorder %s2858_s27, %s2858_s27 }
  0x14   :  { %p2865_p6 = por %p2864_p5, %p2863_p4 }
  0x16   :  { %p2866_p7 = pnand %p2865_p6, %p2859_p3 }
  0x18   :  { %2869 = shalt.err (!%p2866_p7)
}
  0x19   :  { %s3219_s28 = smov 192   ;;  %s3220_s29 = smov 12  }
  0x1a   :  { %50 = dma.hbm_to_vmem [thread:$0]  %s3613_s1, 18816, %s45_s19, [#allocation6], %s3219_s28, %s3219_s28, %s3220_s29  }
  0x1b   :  { %s3221_s17 = smov [#allocation8]   ;;  %s3222_s20 = smov [#allocation11]  }
  0x1c   :  { %s67_s18 = sshll.u32 %s3221_s17, 4  ;;  %s87_s21 = sshll.u32 %s3222_s20, 4  ;;  %s68_s18 = int_to_ptr.vmem [resolvable:$true] %s67_s18  ;;  %s88_s21 = int_to_ptr.vmem [resolvable:$true] %s87_s21 }
  0x1d   :  { %s2870_s24 = scalar_lea.hbm %s3615_s3, 48 }
  0x1e   :  { %p2871_p8 = scmp.ne.s32.totalorder %s3615_s3, %s2870_s24  ;;  %p2874_p9 = scmp.lt.u32.totalorder %s2870_s24, %s3615_s3 }
  0x20   :  { %p2876_p10 = pnand %p2874_p9, %p2871_p8 }
  0x22   :  { %2879 = shalt.err (!%p2876_p10)
}
  0x23   :  { %s2880_s1 = scalar_lea.vmem %s68_s18, 48  ;;  %s2884_s19 = scalar_lea.vmem %s68_s18, 64 }
  0x24   :  { %p2881_p11 = scmp.ne.s32.totalorder %s68_s18, %s2880_s1  ;;  %p2885_p12 = scmp.lt.s32.totalorder %s68_s18, %s68_s18 }
  0x25   :  { %p2886_p13 = scmp.lt.s32.totalorder %s2884_s19, %s2880_s1 }
  0x27   :  { %p2887_p0 = por %p2886_p13, %p2885_p12 }
  0x29   :  { %p2888_p1 = pnand %p2887_p0, %p2881_p11 }
  0x2b   :  { %2891 = shalt.err (!%p2888_p1)
}
  0x2c   :  { %70 = dma.hbm_to_vmem [thread:$0]  %s3615_s3, 48, %s68_s18, [#allocation9]  }
  0x2d   :  { %s2892_s15 = scalar_lea.hbm %s3617_s5, 384 }
  0x2e   :  { %p2893_p2 = scmp.ne.s32.totalorder %s3617_s5, %s2892_s15  ;;  %p2896_p3 = scmp.lt.u32.totalorder %s2892_s15, %s3617_s5 }
  0x30   :  { %p2898_p4 = pnand %p2896_p3, %p2893_p2 }
  0x32   :  { %2901 = shalt.err (!%p2898_p4)
}
  0x33   :  { %s2902_s24 = scalar_lea.vmem %s88_s21, 384  ;;  %p2907_p6 = scmp.lt.s32.totalorder %s88_s21, %s88_s21 }
  0x34   :  { %p2903_p5 = scmp.ne.s32.totalorder %s88_s21, %s2902_s24  ;;  %p2908_p7 = scmp.lt.s32.totalorder %s2902_s24, %s2902_s24 }
  0x36   :  { %p2909_p8 = por %p2908_p7, %p2907_p6 }
  0x38   :  { %p2910_p9 = pnand %p2909_p8, %p2903_p5 }
  0x3a   :  { %2913 = shalt.err (!%p2910_p9)
}
  0x3b   :  { %90 = dma.hbm_to_vmem [thread:$0]  %s3617_s5, 384, %s88_s21, [#allocation12]  }
  0x3c   :  { %s3223_s25 = smov [#allocation14]   ;;  %s2914_s19 = scalar_lea.hbm %s3619_s7, 3072 }
  0x3d   :  { %s106_s26 = sshll.u32 %s3223_s25, 4  ;;  %p2915_p10 = scmp.ne.s32.totalorder %s3619_s7, %s2914_s19  ;;  %s107_s26 = int_to_ptr.vmem [resolvable:$true] %s106_s26 }
  0x3e   :  { %p2918_p11 = scmp.lt.u32.totalorder %s2914_s19, %s3619_s7 }
  0x40   :  { %p2920_p12 = pnand %p2918_p11, %p2915_p10 }
  0x42   :  { %2923 = shalt.err (!%p2920_p12)
}
  0x43   :  { %s2924_s15 = scalar_lea.vmem %s107_s26, 3072  ;;  %p2929_p0 = scmp.lt.s32.totalorder %s107_s26, %s107_s26 }
  0x44   :  { %p2925_p13 = scmp.ne.s32.totalorder %s107_s26, %s2924_s15  ;;  %p2930_p1 = scmp.lt.s32.totalorder %s2924_s15, %s2924_s15 }
  0x46   :  { %p2931_p2 = por %p2930_p1, %p2929_p0 }
  0x48   :  { %p2932_p3 = pnand %p2931_p2, %p2925_p13 }
  0x4a   :  { %2935 = shalt.err (!%p2932_p3)
}
  0x4b   :  { %s3224_s5 = smov 64   ;;  %s3225_s21 = smov 4  }
  0x4c   :  { %112 = dma.hbm_to_vmem [thread:$0]  %s3619_s7, 3072, %s107_s26, [#allocation15], %s3224_s5, %s3224_s5, %s3225_s21  }
  0x4d   :  { %s3226_s22 = smov [#allocation17]   ;;  %s3227_s24 = smov [#allocation20]  }
  0x4e   :  { %s129_s23 = sshll.u32 %s3226_s22, 4  ;;  %s149_s3 = sshll.u32 %s3227_s24, 4  ;;  %s130_s23 = int_to_ptr.vmem [resolvable:$true] %s129_s23  ;;  %s150_s3 = int_to_ptr.vmem [resolvable:$true] %s149_s3 }
  0x4f   :  { %s2936_s27 = scalar_lea.hbm %s3621_s9, 16 }
  0x50   :  { %p2937_p4 = scmp.ne.s32.totalorder %s3621_s9, %s2936_s27  ;;  %p2940_p5 = scmp.lt.u32.totalorder %s2936_s27, %s3621_s9 }
  0x52   :  { %p2942_p6 = pnand %p2940_p5, %p2937_p4 }
  0x54   :  { %2945 = shalt.err (!%p2942_p6)
}
  0x55   :  { %s2946_s7 = scalar_lea.vmem %s130_s23, 16  ;;  %s2950_s26 = scalar_lea.vmem %s130_s23, 32 }
  0x56   :  { %p2947_p7 = scmp.ne.s32.totalorder %s130_s23, %s2946_s7  ;;  %p2951_p8 = scmp.lt.s32.totalorder %s130_s23, %s130_s23 }
  0x57   :  { %p2952_p9 = scmp.lt.s32.totalorder %s2950_s26, %s2946_s7 }
  0x59   :  { %p2953_p10 = por %p2952_p9, %p2951_p8 }
  0x5b   :  { %p2954_p11 = pnand %p2953_p10, %p2947_p7 }
  0x5d   :  { %2957 = shalt.err (!%p2954_p11)
}
  0x5e   :  { %132 = dma.hbm_to_vmem [thread:$0]  %s3621_s9, 16, %s130_s23, [#allocation18]  }
  0x5f   :  { %s2958_s20 = scalar_lea.hbm %s3623_s11, 128 }
  0x60   :  { %p2959_p12 = scmp.ne.s32.totalorder %s3623_s11, %s2958_s20  ;;  %p2962_p13 = scmp.lt.u32.totalorder %s2958_s20, %s3623_s11 }
  0x62   :  { %p2964_p0 = pnand %p2962_p13, %p2959_p12 }
  0x64   :  { %2967 = shalt.err (!%p2964_p0)
}
  0x65   :  { %s2968_s27 = scalar_lea.vmem %s150_s3, 128  ;;  %p2973_p2 = scmp.lt.s32.totalorder %s150_s3, %s150_s3 }
  0x66   :  { %p2969_p1 = scmp.ne.s32.totalorder %s150_s3, %s2968_s27  ;;  %p2974_p3 = scmp.lt.s32.totalorder %s2968_s27, %s2968_s27 }
  0x68   :  { %p2975_p4 = por %p2974_p3, %p2973_p2 }
  0x6a   :  { %p2976_p5 = pnand %p2975_p4, %p2969_p1 }
  0x6c   :  { %2979 = shalt.err (!%p2976_p5)
}
  0x6d   :  { %152 = dma.hbm_to_vmem [thread:$0]  %s3623_s11, 128, %s150_s3, [#allocation21]  }
  0x6e   :  { %s3228_s1 = smov [#allocation23]   ;;  %s3229_s28 = smov [#allocation2]  }
  0x6f   :  { %s168_s19 = sshll.u32 %s3228_s1, 4  ;;  %s35_s29 = sshll.u32 %s3229_s28, 4  ;;  %s169_s19 = int_to_ptr.vmem [resolvable:$true] %s168_s19  ;;  %s36_s29 = int_to_ptr.vmem [resolvable:$true] %s35_s29 }
  0x70   :  { %s2980_s30 = scalar_lea.hbm %s3625_s13, 1024 }
  0x71   :  { %p2981_p6 = scmp.ne.s32.totalorder %s3625_s13, %s2980_s30  ;;  %p2984_p7 = scmp.lt.u32.totalorder %s2980_s30, %s3625_s13 }
  0x73   :  { %p2986_p8 = pnand %p2984_p7, %p2981_p6 }
  0x75   :  { %2989 = shalt.err (!%p2986_p8)
}
  0x76   :  { %s2990_s11 = scalar_lea.vmem %s169_s19, 1024  ;;  %p2995_p10 = scmp.lt.s32.totalorder %s169_s19, %s169_s19 }
  0x77   :  { %p2991_p9 = scmp.ne.s32.totalorder %s169_s19, %s2990_s11  ;;  %p2996_p11 = scmp.lt.s32.totalorder %s2990_s11, %s2990_s11 }
  0x79   :  { %p2997_p12 = por %p2996_p11, %p2995_p10 }
  0x7b   :  { %p2998_p13 = pnand %p2997_p12, %p2991_p9 }
  0x7d   :  { %3001 = shalt.err (!%p2998_p13)
}
  0x7e   :  { %174 = dma.hbm_to_vmem [thread:$0]  %s3625_s13, 1024, %s169_s19, [#allocation24], %s3224_s5, %s3224_s5, %s3225_s21  }
  0x7f   :  { %s3002_s25 = scalar_lea.hbm %s3612_s0, 448 }
  0x80   :  { %p3003_p0 = scmp.ne.s32.totalorder %s3612_s0, %s3002_s25  ;;  %p3006_p1 = scmp.lt.u32.totalorder %s3002_s25, %s3612_s0 }
  0x82   :  { %p3008_p2 = pnand %p3006_p1, %p3003_p0 }
  0x84   :  { %3011 = shalt.err (!%p3008_p2)
}
  0x85   :  { %s3012_s28 = scalar_lea.vmem %s36_s29, 448  ;;  %p3017_p4 = scmp.lt.s32.totalorder %s36_s29, %s36_s29 }
  0x86   :  { %p3013_p3 = scmp.ne.s32.totalorder %s36_s29, %s3012_s28  ;;  %p3018_p5 = scmp.lt.s32.totalorder %s3012_s28, %s3012_s28 }
  0x88   :  { %p3019_p6 = por %p3018_p5, %p3017_p4 }
  0x8a   :  { %p3020_p7 = pnand %p3019_p6, %p3013_p3 }
  0x8c   :  { %3023 = shalt.err (!%p3020_p7)
}
  0x8d   :  { %38 = dma.hbm_to_vmem [thread:$0]  %s3612_s0, 448, %s36_s29, [#allocation3]  }
  0x8e   :  { %s3230_s21 = smov [#allocation7]   ;;  %s3231_s7 = smov [#allocation10]  }
  0x8f   :  { %s57_s19 = sshll.u32 %s3230_s21, 4  ;;  %s77_s26 = sshll.u32 %s3231_s7, 4  ;;  %s58_s19 = int_to_ptr.vmem [resolvable:$true] %s57_s19  ;;  %s78_s26 = int_to_ptr.vmem [resolvable:$true] %s77_s26 }
  0x90   :  { %s3024_s15 = scalar_lea.hbm %s3614_s2, 48 }
  0x91   :  { %p3025_p8 = scmp.ne.s32.totalorder %s3614_s2, %s3024_s15  ;;  %p3028_p9 = scmp.lt.u32.totalorder %s3024_s15, %s3614_s2 }
  0x93   :  { %p3030_p10 = pnand %p3028_p9, %p3025_p8 }
  0x95   :  { %3033 = shalt.err (!%p3030_p10)
}
  0x96   :  { %s3034_s0 = scalar_lea.vmem %s58_s19, 48  ;;  %s3038_s29 = scalar_lea.vmem %s58_s19, 64 }
  0x97   :  { %p3035_p11 = scmp.ne.s32.totalorder %s58_s19, %s3034_s0  ;;  %p3039_p12 = scmp.lt.s32.totalorder %s58_s19, %s58_s19 }
  0x98   :  { %p3040_p13 = scmp.lt.s32.totalorder %s3038_s29, %s3034_s0 }
  0x9a   :  { %p3041_p0 = por %p3040_p13, %p3039_p12 }
  0x9c   :  { %p3042_p1 = pnand %p3041_p0, %p3035_p11 }
  0x9e   :  { %3045 = shalt.err (!%p3042_p1)
}
  0x9f   :  { %60 = dma.hbm_to_vmem [thread:$0]  %s3614_s2, 48, %s58_s19, [#allocation6]  }
  0xa0   :  { %s3046_s27 = scalar_lea.hbm %s3616_s4, 48 }
  0xa1   :  { %p3047_p2 = scmp.ne.s32.totalorder %s3616_s4, %s3046_s27  ;;  %p3050_p3 = scmp.lt.u32.totalorder %s3046_s27, %s3616_s4 }
  0xa3   :  { %p3052_p4 = pnand %p3050_p3, %p3047_p2 }
  0xa5   :  { %3055 = shalt.err (!%p3052_p4)
}
  0xa6   :  { %s3056_s13 = scalar_lea.vmem %s78_s26, 48  ;;  %s3060_s5 = scalar_lea.vmem %s78_s26, 64 }
  0xa7   :  { %p3057_p5 = scmp.ne.s32.totalorder %s78_s26, %s3056_s13  ;;  %p3061_p6 = scmp.lt.s32.totalorder %s78_s26, %s78_s26 }
  0xa8   :  { %p3062_p7 = scmp.lt.s32.totalorder %s3060_s5, %s3056_s13 }
  0xaa   :  { %p3063_p8 = por %p3062_p7, %p3061_p6 }
  0xac   :  { %p3064_p9 = pnand %p3063_p8, %p3057_p5 }
  0xae   :  { %3067 = shalt.err (!%p3064_p9)
}
  0xaf   :  { %80 = dma.hbm_to_vmem [thread:$0]  %s3616_s4, 48, %s78_s26, [#allocation9]  }
  0xb0   :  { %s3232_s19 = smov [#allocation13]   ;;  %s3233_s30 = smov [#allocation16]  }
  0xb1   :  { %s97_s7 = sshll.u32 %s3232_s19, 4  ;;  %s119_s16 = sshll.u32 %s3233_s30, 4  ;;  %s98_s7 = int_to_ptr.vmem [resolvable:$true] %s97_s7  ;;  %s120_s16 = int_to_ptr.vmem [resolvable:$true] %s119_s16 }
  0xb2   :  { %s3068_s20 = scalar_lea.hbm %s3618_s6, 384 }
  0xb3   :  { %p3069_p10 = scmp.ne.s32.totalorder %s3618_s6, %s3068_s20  ;;  %p3072_p11 = scmp.lt.u32.totalorder %s3068_s20, %s3618_s6 }
  0xb5   :  { %p3074_p12 = pnand %p3072_p11, %p3069_p10 }
  0xb7   :  { %3077 = shalt.err (!%p3074_p12)
}
  0xb8   :  { %s3078_s4 = scalar_lea.vmem %s98_s7, 384  ;;  %p3083_p0 = scmp.lt.s32.totalorder %s98_s7, %s98_s7 }
  0xb9   :  { %p3079_p13 = scmp.ne.s32.totalorder %s98_s7, %s3078_s4  ;;  %p3084_p1 = scmp.lt.s32.totalorder %s3078_s4, %s3078_s4 }
  0xbb   :  { %p3085_p2 = por %p3084_p1, %p3083_p0 }
  0xbd   :  { %p3086_p3 = pnand %p3085_p2, %p3079_p13 }
  0xbf   :  { %3089 = shalt.err (!%p3086_p3)
}
  0xc0   :  { %100 = dma.hbm_to_vmem [thread:$0]  %s3618_s6, 384, %s98_s7, [#allocation12]  }
  0xc1   :  { %s3090_s25 = scalar_lea.hbm %s3620_s8, 16 }
  0xc2   :  { %p3091_p4 = scmp.ne.s32.totalorder %s3620_s8, %s3090_s25  ;;  %p3094_p5 = scmp.lt.u32.totalorder %s3090_s25, %s3620_s8 }
  0xc4   :  { %p3096_p6 = pnand %p3094_p5, %p3091_p4 }
  0xc6   :  { %3099 = shalt.err (!%p3096_p6)
}
  0xc7   :  { %s3100_s28 = scalar_lea.vmem %s120_s16, 16  ;;  %s3104_s13 = scalar_lea.vmem %s120_s16, 32 }
  0xc8   :  { %p3101_p7 = scmp.ne.s32.totalorder %s120_s16, %s3100_s28  ;;  %p3105_p8 = scmp.lt.s32.totalorder %s120_s16, %s120_s16 }
  0xc9   :  { %p3106_p9 = scmp.lt.s32.totalorder %s3104_s13, %s3100_s28 }
  0xcb   :  { %p3107_p10 = por %p3106_p9, %p3105_p8 }
  0xcd   :  { %p3108_p11 = pnand %p3107_p10, %p3101_p7 }
  0xcf   :  { %3111 = shalt.err (!%p3108_p11)
}
  0xd0   :  { %122 = dma.hbm_to_vmem [thread:$0]  %s3620_s8, 16, %s120_s16, [#allocation15]  }
  0xd1   :  { %s3234_s2 = smov [#allocation19]   ;;  %s3235_s19 = smov [#allocation22]  }
  0xd2   :  { %s139_s21 = sshll.u32 %s3234_s2, 4  ;;  %s159_s7 = sshll.u32 %s3235_s19, 4  ;;  %s140_s21 = int_to_ptr.vmem [resolvable:$true] %s139_s21  ;;  %s160_s7 = int_to_ptr.vmem [resolvable:$true] %s159_s7 }
  0xd3   :  { %s3112_s17 = scalar_lea.hbm %s3622_s10, 16 }
  0xd4   :  { %p3113_p12 = scmp.ne.s32.totalorder %s3622_s10, %s3112_s17  ;;  %p3116_p13 = scmp.lt.u32.totalorder %s3112_s17, %s3622_s10 }
  0xd6   :  { %p3118_p0 = pnand %p3116_p13, %p3113_p12 }
  0xd8   :  { %3121 = shalt.err (!%p3118_p0)
}
  0xd9   :  { %s3122_s8 = scalar_lea.vmem %s140_s21, 16  ;;  %s3126_s16 = scalar_lea.vmem %s140_s21, 32 }
  0xda   :  { %p3123_p1 = scmp.ne.s32.totalorder %s140_s21, %s3122_s8  ;;  %p3127_p2 = scmp.lt.s32.totalorder %s140_s21, %s140_s21 }
  0xdb   :  { %p3128_p3 = scmp.lt.s32.totalorder %s3126_s16, %s3122_s8 }
  0xdd   :  { %p3129_p4 = por %p3128_p3, %p3127_p2 }
  0xdf   :  { %p3130_p5 = pnand %p3129_p4, %p3123_p1 }
  0xe1   :  { %3133 = shalt.err (!%p3130_p5)
}
  0xe2   :  { %142 = dma.hbm_to_vmem [thread:$0]  %s3622_s10, 16, %s140_s21, [#allocation18]  }
  0xe3   :  { %s3134_s24 = scalar_lea.hbm %s3624_s12, 128 }
  0xe4   :  { %p3135_p6 = scmp.ne.s32.totalorder %s3624_s12, %s3134_s24  ;;  %p3138_p7 = scmp.lt.u32.totalorder %s3134_s24, %s3624_s12 }
  0xe6   :  { %p3140_p8 = pnand %p3138_p7, %p3135_p6 }
  0xe8   :  { %3143 = shalt.err (!%p3140_p8)
}
  0xe9   :  { %s3144_s23 = scalar_lea.vmem %s160_s7, 128  ;;  %p3149_p10 = scmp.lt.s32.totalorder %s160_s7, %s160_s7 }
  0xea   :  { %p3145_p9 = scmp.ne.s32.totalorder %s160_s7, %s3144_s23  ;;  %p3150_p11 = scmp.lt.s32.totalorder %s3144_s23, %s3144_s23 }
  0xec   :  { %p3151_p12 = por %p3150_p11, %p3149_p10 }
  0xee   :  { %p3152_p13 = pnand %p3151_p12, %p3145_p9 }
  0xf0   :  { %3155 = shalt.err (!%p3152_p13)
}
  0xf1   :  { %162 = dma.hbm_to_vmem [thread:$0]  %s3624_s12, 128, %s160_s7, [#allocation21]  }
  0xf2   :  { %s3236_s28 = smov [#allocation25]   ;;  %s3156_s2 = scalar_lea.hbm %s3626_s14, 16 }
  0xf3   :  { %s181_s13 = sshll.u32 %s3236_s28, 4  ;;  %p3157_p0 = scmp.ne.s32.totalorder %s3626_s14, %s3156_s2  ;;  %s182_s13 = int_to_ptr.vmem [resolvable:$true] %s181_s13 }
  0xf4   :  { %p3160_p1 = scmp.lt.u32.totalorder %s3156_s2, %s3626_s14 }
  0xf6   :  { %p3162_p2 = pnand %p3160_p1, %p3157_p0 }
  0xf8   :  { %3165 = shalt.err (!%p3162_p2)
}
  0xf9   :  { %s3166_s17 = scalar_lea.vmem %s182_s13, 16  ;;  %s3170_s12 = scalar_lea.vmem %s182_s13, 32 }
  0xfa   :  { %p3167_p3 = scmp.ne.s32.totalorder %s182_s13, %s3166_s17  ;;  %p3171_p4 = scmp.lt.s32.totalorder %s182_s13, %s182_s13 }
  0xfb   :  { %p3172_p5 = scmp.lt.s32.totalorder %s3170_s12, %s3166_s17 }
  0xfd   :  { %p3173_p6 = por %p3172_p5, %p3171_p4 }
  0xff   :  { %p3174_p7 = pnand %p3173_p6, %p3167_p3 }
 0x101   :  { %3177 = shalt.err (!%p3174_p7)
}
 0x102   :  { %184 = dma.hbm_to_vmem [thread:$0]  %s3626_s14, 16, %s182_s13, [#allocation24]  }
 0x103   :  { %3200 = dma.done.wait [#allocation3], 448  }
 0x104   :  { %3201 = vsyncadd [#allocation3], 4294966848 }
 0x105   :  { %3202 = dma.done.wait [#allocation6], 18864  }
 0x106   :  { %3203 = vsyncadd [#allocation6], 4294948432 }
 0x107   :  { %3204 = dma.done.wait [#allocation9], 96  }
 0x108   :  { %3205 = vsyncadd [#allocation9], 4294967200 }
 0x109   :  { %3206 = dma.done.wait [#allocation12], 768  }
 0x10a   :  { %3207 = vsyncadd [#allocation12], 4294966528 }
 0x10b   :  { %3208 = dma.done.wait [#allocation15], 3088  }
 0x10c   :  { %3209 = vsyncadd [#allocation15], 4294964208 }
 0x10d   :  { %3210 = dma.done.wait [#allocation18], 32  }
 0x10e   :  { %3211 = vsyncadd [#allocation18], 4294967264 }
 0x10f   :  { %3212 = dma.done.wait [#allocation21], 256  }
 0x110   :  { %3213 = vsyncadd [#allocation21], 4294967040 }
 0x111   :  { %3214 = dma.done.wait [#allocation24], 1040  }
 0x112   :  { %3215 = vsyncadd [#allocation24], 4294966256  ;;  %v2605_v0 = vld [vmem:[#allocation5 + $0x4] ss:$12 sps:$4 sm:$0xff]   ;;  %v2607_v1 = vld [vmem:[#allocation5] ss:$12 sps:$4 sm:$0xff]  }
 0x113   :  { %1265 = vmatprep.subr.bf16.mxu0 %v2605_v0  ;;  %v2608_v2 = vld [vmem:[#allocation5 + $0x1c] ss:$12 sps:$4 sm:$0xff]   ;;  %v2610_v3 = vld [vmem:[#allocation5 + $0x18] ss:$12 sps:$4 sm:$0xff]   ;;  %v2611_v4 = vld [vmem:[#allocation5 + $0x34] ss:$12 sps:$4 sm:$0xff]  }
 0x114   :  { %1266 = vmatpush1.bf16.msra.mxu0 %v2607_v1  ;;  %v2613_v5 = vld [vmem:[#allocation5 + $0x30] ss:$12 sps:$4 sm:$0xff]   ;;  %v2614_v6 = vld [vmem:[#allocation5 + $0x4c] ss:$12 sps:$4 sm:$0xff]   ;;  %v2616_v7 = vld [vmem:[#allocation5 + $0x48] ss:$12 sps:$4 sm:$0xff]  }
 0x115   :  { %1267 = vmatprep.subr.bf16.mxu0 %v2608_v2  ;;  %v2617_v8 = vld [vmem:[#allocation5 + $0x64] ss:$12 sps:$4 sm:$0xff]   ;;  %v2631_v9 = vld [vmem:[#allocation5 + $0xc8] ss:$12 sps:$4 sm:$0xff]   ;;  %v2619_v11 = vld [vmem:[#allocation5 + $0x60] ss:$12 sps:$4 sm:$0xff]  }
 0x116   :  { %v2633_v10 = vld [vmem:[#allocation5 + $0x8] ss:$12 sps:$4 sm:$0xff]   ;;  %2413 = vmatprep.subr.bf16.mxu1 %v2631_v9  ;;  %v2636_v12 = vld [vmem:[#allocation5 + $0xe0] ss:$12 sps:$4 sm:$0xff]   ;;  %v2622_v15 = vld [vmem:[#allocation5 + $0x78] ss:$12 sps:$4 sm:$0xff]  }
 0x117   :  { %2414 = vmatpush3.bf16.msra.mxu1 %v2633_v10  ;;  %v2620_v13 = vld [vmem:[#allocation5 + $0x7c] ss:$12 sps:$4 sm:$0xff]   ;;  %v2638_v14 = vld [vmem:[#allocation5 + $0x20] ss:$12 sps:$4 sm:$0xff]   ;;  %v2641_v17 = vld [vmem:[#allocation5 + $0xf8] ss:$12 sps:$4 sm:$0xff]  }
 0x118   :  { %1268 = vmatpush1.bf16.msra.mxu0 %v2610_v3  ;;  %2415 = vmatprep.subr.bf16.mxu1 %v2636_v12  ;;  %v2623_v16 = vld [vmem:[#allocation5 + $0x94] ss:$12 sps:$4 sm:$0xff]   ;;  %v2643_v18 = vld [vmem:[#allocation5 + $0x38] ss:$12 sps:$4 sm:$0xff]   ;;  %v2625_v19 = vld [vmem:[#allocation5 + $0x90] ss:$12 sps:$4 sm:$0xff]  }
 0x119   :  { %1269 = vmatprep.subr.bf16.mxu0 %v2611_v4  ;;  %v2646_v20 = vld [vmem:[#allocation5 + $0x110] ss:$12 sps:$4 sm:$0xff]   ;;  %v2626_v22 = vld [vmem:[#allocation5 + $0xac] ss:$12 sps:$4 sm:$0xff]   ;;  %v2651_v23 = vld [vmem:[#allocation5 + $0x128] ss:$12 sps:$4 sm:$0xff]  }
 0x11a   :  { %v2648_v21 = vld [vmem:[#allocation5 + $0x50] ss:$12 sps:$4 sm:$0xff]   ;;  %v2628_v24 = vld [vmem:[#allocation5 + $0xa8] ss:$12 sps:$4 sm:$0xff]   ;;  %v2656_v27 = vld [vmem:[#allocation5 + $0x140] ss:$12 sps:$4 sm:$0xff]  }
 0x11b   :  { %2416 = vmatpush3.bf16.msra.mxu1 %v2638_v14  ;;  %v2653_v25 = vld [vmem:[#allocation5 + $0x68] ss:$12 sps:$4 sm:$0xff]   ;;  %v2629_v26 = vld [vmem:[#allocation5 + $0xc4] ss:$12 sps:$4 sm:$0xff]   ;;  %v2632_v28 = vld [vmem:[#allocation5 + $0xc0] ss:$12 sps:$4 sm:$0xff]  }
 0x11c   :  { %1270 = vmatpush1.bf16.msra.mxu0 %v2613_v5  ;;  %2417 = vmatprep.subr.bf16.mxu1 %v2641_v17  ;;  %v2658_v29 = vld [vmem:[#allocation5 + $0x80] ss:$12 sps:$4 sm:$0xff]   ;;  %v2634_v30 = vld [vmem:[#allocation5 + $0xdc] ss:$12 sps:$4 sm:$0xff]   ;;  %v2661_v31 = vld [vmem:[#allocation5 + $0x158] ss:$12 sps:$4 sm:$0xff]  }
 0x11d   :  { %1271 = vmatprep.subr.bf16.mxu0 %v2614_v6  ;;  %v2637_v32 = vld [vmem:[#allocation5 + $0xd8] ss:$12 sps:$4 sm:$0xff]   ;;  %v2639_v33 = vld [vmem:[#allocation5 + $0xf4] ss:$12 sps:$4 sm:$0xff]   ;;  %v2666_v35 = vld [vmem:[#allocation5 + $0x170] ss:$12 sps:$4 sm:$0xff]  }
 0x11e   :  { %v2663_v34 = vld [vmem:[#allocation5 + $0x98] ss:$12 sps:$4 sm:$0xff]   ;;  %v2642_v37 = vld [vmem:[#allocation5 + $0xf0] ss:$12 sps:$4 sm:$0xff]   ;;  %v2674_v41 = vld [vmem:[#allocation5 + $0x248] ss:$12 sps:$4 sm:$0xff]  }
 0x11f   :  { %2418 = vmatpush3.bf16.msra.mxu1 %v2643_v18  ;;  %v236_v36 = vld [vmem:[#allocation2] sm:$0xff]  ;;  %v2644_v38 = vld [vmem:[#allocation5 + $0x10c] ss:$12 sps:$4 sm:$0xff]   ;;  %v2668_v40 = vld [vmem:[#allocation5 + $0xb0] ss:$12 sps:$4 sm:$0xff]   ;;  %vm3238_vm0 = vmmov 0  }
 0x120   :  { %1272 = vmatpush1.bf16.msra.mxu0 %v2616_v7  ;;  %2419 = vmatprep.subr.bf16.mxu1 %v2646_v20  ;;  %v2224_v39 = vcombine.high %v236_v36, %v236_v36  ;;  %v2647_v42 = vld [vmem:[#allocation5 + $0x108] ss:$12 sps:$4 sm:$0xff]   ;;  %v2649_v43 = vld [vmem:[#allocation5 + $0x124] ss:$12 sps:$4 sm:$0xff]   ;;  %v2223_v44 = vcombine.low %v236_v36, %v236_v36  ;;  %v2679_v46 = vld [vmem:[#allocation5 + $0x260] ss:$12 sps:$4 sm:$0xff]  }
 0x121   :  { %1273 = vmatprep.subr.bf16.mxu0 %v2617_v8  ;;  %v2675_v45 = vld [vmem:[#allocation5 + $0x188] ss:$12 sps:$4 sm:$0xff]   ;;  %v2652_v47 = vld [vmem:[#allocation5 + $0x120] ss:$12 sps:$4 sm:$0xff]   ;;  %v2684_v50 = vld [vmem:[#allocation5 + $0x278] ss:$12 sps:$4 sm:$0xff]  }
 0x122   :  { %1297 = vmatprep.mubr.bf16.mxu0 %v2224_v39  ;;  %1461 = vmatprep.mubr.bf16.mxu1 %v2224_v39  ;;  %v2680_v48 = vld [vmem:[#allocation5 + $0x1a0] ss:$12 sps:$4 sm:$0xff]   ;;  %v2654_v49 = vld [vmem:[#allocation5 + $0x13c] ss:$12 sps:$4 sm:$0xff]   ;;  %v2657_v51 = vld [vmem:[#allocation5 + $0x138] ss:$12 sps:$4 sm:$0xff]  }
 0x123   :  { %2420 = vmatpush3.bf16.msra.mxu1 %v2648_v21  ;;  %v2659_v52 = vld [vmem:[#allocation5 + $0x154] ss:$12 sps:$4 sm:$0xff]   ;;  %v2685_v53 = vld [vmem:[#allocation5 + $0x1b8] ss:$12 sps:$4 sm:$0xff]   ;;  %v2689_v54 = vld [vmem:[#allocation5 + $0x290] ss:$12 sps:$4 sm:$0xff]  }
 0x124   :  { %1274 = vmatpush1.bf16.msra.mxu0 %v2619_v11  ;;  %2421 = vmatprep.subr.bf16.mxu1 %v2651_v23  ;;  %v2662_v55 = vld [vmem:[#allocation5 + $0x150] ss:$12 sps:$4 sm:$0xff]   ;;  %v2664_v56 = vld [vmem:[#allocation5 + $0x16c] ss:$12 sps:$4 sm:$0xff]   ;;  %v2694_v58 = vld [vmem:[#allocation5 + $0x2a8] ss:$12 sps:$4 sm:$0xff]  }
 0x125   :  { %1275 = vmatprep.subr.bf16.mxu0 %v2620_v13  ;;  %v2690_v57 = vld [vmem:[#allocation5 + $0x1d0] ss:$12 sps:$4 sm:$0xff]   ;;  %v2667_v59 = vld [vmem:[#allocation5 + $0x168] ss:$12 sps:$4 sm:$0xff]   ;;  %v2699_v62 = vld [vmem:[#allocation5 + $0x2c0] ss:$12 sps:$4 sm:$0xff]  }
 0x126   :  { %v2673_v60 = vld [vmem:[#allocation5 + $0x184] ss:$12 sps:$4 sm:$0xff]   ;;  %v2695_v61 = vld [vmem:[#allocation5 + $0x1e8] ss:$12 sps:$4 sm:$0xff]   ;;  %v2671_v63 = vld [vmem:[#allocation5 + $0x180] ss:$12 sps:$4 sm:$0xff]  }
 0x127   :  { %2422 = vmatpush3.bf16.msra.mxu1 %v2653_v25  ;;  %v2678_v0 = vld [vmem:[#allocation5 + $0x19c] ss:$12 sps:$4 sm:$0xff]   ;;  %v2700_v1 = vld [vmem:[#allocation5 + $0x200] ss:$12 sps:$4 sm:$0xff]   ;;  %v2704_v2 = vld [vmem:[#allocation5 + $0x2d8] ss:$12 sps:$4 sm:$0xff]  }
 0x128   :  { %1276 = vmatpush1.bf16.msra.mxu0 %v2622_v15  ;;  %2423 = vmatprep.subr.bf16.mxu1 %v2656_v27  ;;  %v2676_v3 = vld [vmem:[#allocation5 + $0x198] ss:$12 sps:$4 sm:$0xff]   ;;  %v237_v4 = vld [vmem:[#allocation2 + $0x8] sm:$0xff]  ;;  %v2683_v5 = vld [vmem:[#allocation5 + $0x1b4] ss:$12 sps:$4 sm:$0xff]   ;;  %vm1261_vm1 = vcmask 130048  }
 0x129   :  { %1277 = vmatprep.subr.bf16.mxu0 %v2623_v16  ;;  %v2226_v6 = vcombine.high %v237_v4, %v237_v4  ;;  %v2705_v7 = vld [vmem:[#allocation5 + $0x218] ss:$12 sps:$4 sm:$0xff]   ;;  %v2709_v8 = vld [vmem:[#allocation5 + $0x2f0] ss:$12 sps:$4 sm:$0xff]   ;;  %v2716_v12 = vld [vmem:[#allocation5 + $0x3c8] ss:$12 sps:$4 sm:$0xff]   ;;  %v3508_v14 = vcombine.low %v237_v4, %v237_v4 }
 0x12a   :  { %v2681_v9 = vld [vmem:[#allocation5 + $0x1b0] ss:$12 sps:$4 sm:$0xff]   ;;  %v2688_v11 = vld [vmem:[#allocation5 + $0x1cc] ss:$12 sps:$4 sm:$0xff]   ;;  %v2686_v13 = vld [vmem:[#allocation5 + $0x1c8] ss:$12 sps:$4 sm:$0xff]  }
 0x12b   :  { %2424 = vmatpush3.bf16.msra.mxu1 %v2658_v29  ;;  %v2710_v10 = vld [vmem:[#allocation5 + $0x230] ss:$12 sps:$4 sm:$0xff]   ;;  %v2717_v16 = vld [vmem:[#allocation5 + $0x308] ss:$12 sps:$4 sm:$0xff]   ;;  %v2721_v17 = vld [vmem:[#allocation5 + $0x3e0] ss:$12 sps:$4 sm:$0xff]  }
 0x12c   :  { %1278 = vmatpush1.bf16.msra.mxu0 %v2625_v19  ;;  %2425 = vmatprep.subr.bf16.mxu1 %v2661_v31  ;;  %v2693_v15 = vld [vmem:[#allocation5 + $0x1e4] ss:$12 sps:$4 sm:$0xff]   ;;  %v2691_v18 = vld [vmem:[#allocation5 + $0x1e0] ss:$12 sps:$4 sm:$0xff]   ;;  %v2698_v19 = vld [vmem:[#allocation5 + $0x1fc] ss:$12 sps:$4 sm:$0xff]  }
 0x12d   :  { %1279 = vmatprep.subr.bf16.mxu0 %v2626_v22  ;;  %v2722_v20 = vld [vmem:[#allocation5 + $0x320] ss:$12 sps:$4 sm:$0xff]   ;;  %v2726_v21 = vld [vmem:[#allocation5 + $0x3f8] ss:$12 sps:$4 sm:$0xff]   ;;  %v2731_v25 = vld [vmem:[#allocation5 + $0x410] ss:$12 sps:$4 sm:$0xff]  }
 0x12e   :  { %v2696_v22 = vld [vmem:[#allocation5 + $0x1f8] ss:$12 sps:$4 sm:$0xff]   ;;  %v2703_v23 = vld [vmem:[#allocation5 + $0x214] ss:$12 sps:$4 sm:$0xff]   ;;  %s3241_s14 = smov [#allocation26]  }
 0x12f   :  { %2426 = vmatpush3.bf16.msra.mxu1 %v2663_v34  ;;  %v2708_v27 = vld [vmem:[#allocation5 + $0x22c] ss:$12 sps:$4 sm:$0xff]   ;;  %v2736_v29 = vld [vmem:[#allocation5 + $0x428] ss:$12 sps:$4 sm:$0xff]   ;;  %v2771_v4 = vld [vmem:[#allocation5 + $0x364] ss:$12 sps:$4 sm:$0xff]  }
 0x130   :  { %1280 = vmatpush1.bf16.msra.mxu0 %v2628_v24  ;;  %2427 = vmatprep.subr.bf16.mxu1 %v2666_v35  ;;  %v2727_v24 = vld [vmem:[#allocation5 + $0x338] ss:$12 sps:$4 sm:$0xff]   ;;  %v2737_v31 = vld [vmem:[#allocation5 + $0x368] ss:$12 sps:$4 sm:$0xff]   ;;  %v2741_v34 = vld [vmem:[#allocation5 + $0x440] ss:$12 sps:$4 sm:$0xff]  }
 0x131   :  { %1281 = vmatprep.subr.bf16.mxu0 %v2629_v26  ;;  %v2701_v26 = vld [vmem:[#allocation5 + $0x210] ss:$12 sps:$4 sm:$0xff]   ;;  %v2711_v36 = vld [vmem:[#allocation5 + $0x240] ss:$12 sps:$4 sm:$0xff]   ;;  %v2746_v39 = vld [vmem:[#allocation5 + $0x458] ss:$12 sps:$4 sm:$0xff]  }
 0x132   :  { %s2206_s11 = sshll.u32 %s3241_s14, 4  ;;  %s2207_s11 = int_to_ptr.vmem [resolvable:$true] %s2206_s11 }
 0x133   :  { %2428 = vmatpush3.bf16.msra.mxu1 %v2668_v40  ;;  %v2718_v40 = vld [vmem:[#allocation5 + $0x258] ss:$12 sps:$4 sm:$0xff]   ;;  %s3178_s3 = scalar_lea.vmem %s2207_s11, 128  ;;  %p3183_p9 = scmp.lt.s32.totalorder %s2207_s11, %s2207_s11 }
 0x134   :  { %1282 = vmatpush1.bf16.msra.mxu0 %v2632_v28  ;;  %2435 = vmatprep.subr.bf16.mxu1 %v2674_v41  ;;  %v2732_v28 = vld [vmem:[#allocation5 + $0x350] ss:$12 sps:$4 sm:$0xff]   ;;  %v2725_v41 = vld [vmem:[#allocation5 + $0x274] ss:$12 sps:$4 sm:$0xff]   ;;  %p3179_p8 = scmp.ne.s32.totalorder %s2207_s11, %s3178_s3  ;;  %p3184_p10 = scmp.lt.s32.totalorder %s3178_s3, %s3178_s3 }
 0x135   :  { %1283 = vmatprep.subr.bf16.mxu0 %v2634_v30  ;;  %v2706_v30 = vld [vmem:[#allocation5 + $0x228] ss:$12 sps:$4 sm:$0xff]  }
 0x136   :  { %1462 = vmatmul.mubr.bf16.vlgmr.msra.gmra.mrb[0].mxu1 %v2223_v44  ;;  %p3185_p11 = por %p3184_p10, %p3183_p9 }
 0x137   :  { %2436 = vmatpush3.bf16.msra.mxu1 %v2675_v45  ;;  %1501 = vmatprep.mubr.bf16.mxu1 %v2226_v6  ;;  %v2752_v45 = vld [vmem:[#allocation5 + $0x3b0] ss:$12 sps:$4 sm:$0xff]  }
 0x138   :  { %1284 = vmatpush1.bf16.msra.mxu0 %v2637_v32  ;;  %2437 = vmatprep.subr.bf16.mxu1 %v2679_v46  ;;  %v238_v32 = vld [vmem:[#allocation2 + $0x10] sm:$0xff]  ;;  %p3186_p12 = pnand %p3185_p11, %p3179_p8 }
 0x139   :  { %1285 = vmatprep.subr.bf16.mxu0 %v2639_v33  ;;  %v2713_v33 = vld [vmem:[#allocation5 + $0x244] ss:$12 sps:$4 sm:$0xff]   ;;  %v3511_v35 = vcombine.high %v238_v32, %v238_v32  ;;  %v2730_v46 = vld [vmem:[#allocation5 + $0x28c] ss:$12 sps:$4 sm:$0xff]  }
 0x13b   :  { %2438 = vmatpush3.bf16.msra.mxu1 %v2680_v48  ;;  %v2728_v48 = vld [vmem:[#allocation5 + $0x288] ss:$12 sps:$4 sm:$0xff]  }
 0x13c   :  { %1286 = vmatpush1.bf16.msra.mxu0 %v2642_v37  ;;  %2439 = vmatprep.subr.bf16.mxu1 %v2684_v50  ;;  %v2742_v37 = vld [vmem:[#allocation5 + $0x380] ss:$12 sps:$4 sm:$0xff]   ;;  %v2735_v50 = vld [vmem:[#allocation5 + $0x2a4] ss:$12 sps:$4 sm:$0xff]  }
 0x13d   :  { %1287 = vmatprep.subr.bf16.mxu0 %v2644_v38  ;;  %v2720_v38 = vld [vmem:[#allocation5 + $0x25c] ss:$12 sps:$4 sm:$0xff]  }
 0x13f   :  { %2440 = vmatpush3.bf16.msra.mxu1 %v2685_v53  ;;  %v2740_v53 = vld [vmem:[#allocation5 + $0x2bc] ss:$12 sps:$4 sm:$0xff]  }
 0x140   :  { %1288 = vmatpush1.bf16.msra.mxu0 %v2647_v42  ;;  %2441 = vmatprep.subr.bf16.mxu1 %v2689_v54  ;;  %v2747_v42 = vld [vmem:[#allocation5 + $0x398] ss:$12 sps:$4 sm:$0xff]   ;;  %v3520_v54 = vld [vmem:[#allocation2 + $0x18] ss:$0 sps:$4 sm:$0xff]  }
 0x141   :  { %1289 = vmatprep.subr.bf16.mxu0 %v2649_v43  ;;  %v2751_v43 = vld [vmem:[#allocation5 + $0x470] ss:$12 sps:$4 sm:$0xff]  }
 0x143   :  { %2442 = vmatpush3.bf16.msra.mxu1 %v2690_v57  ;;  %v2743_v57 = vld [vmem:[#allocation5 + $0x2d0] ss:$12 sps:$4 sm:$0xff]  }
 0x144   :  { %1290 = vmatpush1.bf16.msra.mxu0 %v2652_v47  ;;  %2443 = vmatprep.subr.bf16.mxu1 %v2694_v58  ;;  %v3514_v47 = vcombine.low %v238_v32, %v238_v32  ;;  %v2750_v58 = vld [vmem:[#allocation5 + $0x2ec] ss:$12 sps:$4 sm:$0xff]  }
 0x145   :  { %1291 = vmatprep.subr.bf16.mxu0 %v2654_v49  ;;  %v2761_v49 = vld [vmem:[#allocation5 + $0x488] ss:$12 sps:$4 sm:$0xff]  }
 0x147   :  { %2444 = vmatpush3.bf16.msra.mxu1 %v2695_v61  ;;  %v2755_v61 = vld [vmem:[#allocation5 + $0x300] ss:$12 sps:$4 sm:$0xff]  }
 0x148   :  { %1292 = vmatpush1.bf16.msra.mxu0 %v2657_v51  ;;  %2445 = vmatprep.subr.bf16.mxu1 %v2699_v62  ;;  %v3237_v51 = vmov 0.0   ;;  %v2760_v62 = vld [vmem:[#allocation5 + $0x31c] ss:$12 sps:$4 sm:$0xff]  }
 0x149   :  { %1293 = vmatprep.subr.bf16.mxu0 %v2659_v52  ;;  %v2733_v52 = vld [vmem:[#allocation5 + $0x2a0] ss:$12 sps:$4 sm:$0xff]  }
 0x14b   :  { %2446 = vmatpush3.bf16.msra.mxu1 %v2700_v1  ;;  %v2762_v1 = vld [vmem:[#allocation5 + $0x330] ss:$12 sps:$4 sm:$0xff]  }
 0x14c   :  { %1294 = vmatpush1.bf16.msra.mxu0 %v2662_v55  ;;  %2447 = vmatprep.subr.bf16.mxu1 %v2704_v2  ;;  %v2738_v55 = vld [vmem:[#allocation5 + $0x2b8] ss:$12 sps:$4 sm:$0xff]  }
 0x14d   :  { %1295 = vmatprep.subr.bf16.mxu0 %v2664_v56  ;;  %v2745_v56 = vld [vmem:[#allocation5 + $0x2d4] ss:$12 sps:$4 sm:$0xff]   ;;  %v2768_v2 = vld [vmem:[#allocation5 + $0x34c] ss:$12 sps:$4 sm:$0xff]  }
 0x14f   :  { %2448 = vmatpush3.bf16.msra.mxu1 %v2705_v7  ;;  %v2772_v7 = vld [vmem:[#allocation5 + $0x378] ss:$12 sps:$4 sm:$0xff]  }
 0x150   :  { %1296 = vmatpush1.bf16.msra.mxu0 %v2667_v59  ;;  %2449 = vmatprep.subr.bf16.mxu1 %v2709_v8  ;;  %v2748_v59 = vld [vmem:[#allocation5 + $0x2e8] ss:$12 sps:$4 sm:$0xff]  }
 0x151   :  { %1306 = vmatprep.subr.bf16.mxu0 %v2673_v60  ;;  %v2757_v60 = vld [vmem:[#allocation5 + $0x304] ss:$12 sps:$4 sm:$0xff]   ;;  %v2777_v8 = vld [vmem:[#allocation5 + $0x394] ss:$12 sps:$4 sm:$0xff]  }
 0x153   :  { %1298 = vmatmul.mubr.bf16.vlgmr.msra.gmra.mrb[0].mxu0 %v2223_v44  ;;  %2450 = vmatpush3.bf16.msra.mxu1 %v2710_v10  ;;  %v2723_v44 = vld [vmem:[#allocation5 + $0x270] ss:$12 sps:$4 sm:$0xff]   ;;  %v2780_v10 = vld [vmem:[#allocation5 + $0x3ac] ss:$12 sps:$4 sm:$0xff]  }
 0x154   :  { %1307 = vmatpush1.bf16.msra.mxu0 %v2671_v63  ;;  %1338 = vmatprep.mubr.bf16.mxu0 %v2226_v6  ;;  %v2758_v63 = vld [vmem:[#allocation5 + $0x318] ss:$12 sps:$4 sm:$0xff]   ;;  %v2774_v6 = vld [vmem:[#allocation5 + $0x37c] ss:$12 sps:$4 sm:$0xff]  }
 0x155   :  { %1308 = vmatprep.subr.bf16.mxu0 %v2678_v0  ;;  %2457 = vmatprep.subr.bf16.mxu1 %v2716_v12  ;;  %v2764_v0 = vld [vmem:[#allocation5 + $0x334] ss:$12 sps:$4 sm:$0xff]   ;;  %v2783_v12 = vld [vmem:[#allocation5 + $0x3c4] ss:$12 sps:$4 sm:$0xff]  }
 0x156   :  { %1502 = vmatmul.mubr.bf16.vlgmr.msra.gmra.mrb[4].mxu1 %v3508_v14 }
 0x157   :  { %2458 = vmatpush3.bf16.msra.mxu1 %v2717_v16  ;;  %1541 = vmatprep.mubr.bf16.mxu1 %v3511_v35  ;;  %v2789_v16 = vld [vmem:[#allocation5 + $0x3f4] ss:$12 sps:$4 sm:$0xff]  }
 0x158   :  { %1309 = vmatpush1.bf16.msra.mxu0 %v2676_v3  ;;  %2459 = vmatprep.subr.bf16.mxu1 %v2721_v17  ;;  %v2766_v3 = vld [vmem:[#allocation5 + $0x348] ss:$12 sps:$4 sm:$0xff]   ;;  %v2787_v17 = vld [vmem:[#allocation5 + $0x3f0] ss:$12 sps:$4 sm:$0xff]  }
 0x159   :  { %1310 = vmatprep.subr.bf16.mxu0 %v2683_v5  ;;  %v2769_v5 = vld [vmem:[#allocation5 + $0x360] ss:$12 sps:$4 sm:$0xff]  }
 0x15b   :  { %2460 = vmatpush3.bf16.msra.mxu1 %v2722_v20  ;;  %v2795_v20 = vld [vmem:[#allocation5 + $0x424] ss:$12 sps:$4 sm:$0xff]  }
 0x15c   :  { %1311 = vmatpush1.bf16.msra.mxu0 %v2681_v9  ;;  %2461 = vmatprep.subr.bf16.mxu1 %v2726_v21  ;;  %v2775_v9 = vld [vmem:[#allocation5 + $0x390] ss:$12 sps:$4 sm:$0xff]   ;;  %v2793_v21 = vld [vmem:[#allocation5 + $0x420] ss:$12 sps:$4 sm:$0xff]  }
 0x15d   :  { %1312 = vmatprep.subr.bf16.mxu0 %v2688_v11  ;;  %v2778_v11 = vld [vmem:[#allocation5 + $0x3a8] ss:$12 sps:$4 sm:$0xff]  }
 0x15f   :  { %2462 = vmatpush3.bf16.msra.mxu1 %v2727_v24  ;;  %v2801_v24 = vld [vmem:[#allocation5 + $0x454] ss:$12 sps:$4 sm:$0xff]  }
 0x160   :  { %1313 = vmatpush1.bf16.msra.mxu0 %v2686_v13  ;;  %2463 = vmatprep.subr.bf16.mxu1 %v2731_v25  ;;  %v2781_v13 = vld [vmem:[#allocation5 + $0x3c0] ss:$12 sps:$4 sm:$0xff]   ;;  %v2799_v25 = vld [vmem:[#allocation5 + $0x450] ss:$12 sps:$4 sm:$0xff]  }
 0x161   :  { %1314 = vmatprep.subr.bf16.mxu0 %v2693_v15  ;;  %v2784_v15 = vld [vmem:[#allocation5 + $0x3d8] ss:$12 sps:$4 sm:$0xff]  }
 0x163   :  { %2464 = vmatpush3.bf16.msra.mxu1 %v2732_v28  ;;  %v2807_v28 = vld [vmem:[#allocation5 + $0x484] ss:$12 sps:$4 sm:$0xff]  }
 0x164   :  { %1315 = vmatpush1.bf16.msra.mxu0 %v2691_v18  ;;  %2465 = vmatprep.subr.bf16.mxu1 %v2736_v29  ;;  %v2792_v18 = vld [vmem:[#allocation5 + $0x40c] ss:$12 sps:$4 sm:$0xff]  }
 0x165   :  { %1316 = vmatprep.subr.bf16.mxu0 %v2698_v19  ;;  %v2790_v19 = vld [vmem:[#allocation5 + $0x408] ss:$12 sps:$4 sm:$0xff]   ;;  %v2805_v29 = vld [vmem:[#allocation5 + $0x480] ss:$12 sps:$4 sm:$0xff]  }
 0x167   :  { %2466 = vmatpush3.bf16.msra.mxu1 %v2737_v31 }
 0x168   :  { %1317 = vmatpush1.bf16.msra.mxu0 %v2696_v22  ;;  %2467 = vmatprep.subr.bf16.mxu1 %v2741_v34  ;;  %v2798_v22 = vld [vmem:[#allocation5 + $0x43c] ss:$12 sps:$4 sm:$0xff]  }
 0x169   :  { %1318 = vmatprep.subr.bf16.mxu0 %v2703_v23  ;;  %v2796_v23 = vld [vmem:[#allocation5 + $0x438] ss:$12 sps:$4 sm:$0xff]  }
 0x16b   :  { %2468 = vmatpush3.bf16.msra.mxu1 %v2742_v37 }
 0x16c   :  { %1319 = vmatpush1.bf16.msra.mxu0 %v2701_v26  ;;  %2469 = vmatprep.subr.bf16.mxu1 %v2746_v39  ;;  %v2804_v26 = vld [vmem:[#allocation5 + $0x46c] ss:$12 sps:$4 sm:$0xff]  }
 0x16d   :  { %1320 = vmatprep.subr.bf16.mxu0 %v2708_v27  ;;  %v2802_v27 = vld [vmem:[#allocation5 + $0x468] ss:$12 sps:$4 sm:$0xff]   ;;  %v3534_v39 = vld [vmem:[#allocation7] sm:$0x7] }
 0x16f   :  { %2470 = vmatpush3.bf16.msra.mxu1 %v2747_v42 }
 0x170   :  { %1321 = vmatpush1.bf16.msra.mxu0 %v2706_v30  ;;  %2471 = vmatprep.subr.bf16.mxu1 %v2751_v43  ;;  %v3239_v30 = vmov 0  }
 0x171   :  { %1322 = vmatprep.subr.bf16.mxu0 %v2713_v33 }
 0x173   :  { %2472 = vmatpush3.bf16.msra.mxu1 %v2752_v45 }
 0x174   :  { %1323 = vmatpush1.bf16.msra.mxu0 %v2711_v36  ;;  %2521 = vmatprep.subr.bf16.mxu1 %v3237_v51  ;;  %v231_v36 = vlaneseq }
 0x175   :  { %1324 = vmatprep.subr.bf16.mxu0 %v2720_v38 }
 0x176   :  { %1542 = vmatmul.mubr.bf16.vlgmr.msra.gmra.mrb[8].mxu1 %v3514_v47  ;;  %v3529_v37 = vshrl.u32 %v231_v36, 7 }
 0x177   :  { %2522 = vmatpush3.bf16.msra.mxu1 %v2761_v49  ;;  %2523 = vmatprep.mubr.msk.bf16.mxu1 %vm3238_vm0, %v3237_v51  ;;  %v2809_v49 = vld [vmem:[#allocation14] sm:$0xff]  }
 0x178   :  { %1325 = vmatpush1.bf16.msra.mxu0 %v2718_v40  ;;  %v3532_v38 = vsub.s32 2, %v3529_v37  ;;  %vm233_vm2 = vcmp.lt.s32.totalorder %v3529_v37, 4 }
 0x179   :  { %1326 = vmatprep.subr.bf16.mxu0 %v2725_v41 }
 0x17a   :  { %v449_v40 = vrot.slane %v3534_v39, %v3532_v38 }
 0x17c   :  { %1327 = vmatpush1.bf16.msra.mxu0 %v2723_v44 }
 0x17d   :  { %1328 = vmatprep.subr.bf16.mxu0 %v2730_v46 }
 0x17e   :  { %2524 = vmatmul.mubr.msk.bf16.vlgmr.msra.gmra.mrb[12].mxu1 %vm1261_vm1, %v3520_v54 }
 0x180   :  { %1329 = vmatpush1.bf16.msra.mxu0 %v2728_v48  ;;  %v2808_v48 = vld [vmem:[#allocation14 + $0x40] sm:$0xff]  }
 0x181   :  { %1330 = vmatprep.subr.bf16.mxu0 %v2735_v50  ;;  %2481 = vmatprep.subr.bf16.mxu1 %v2808_v48 }
 0x182   :  { %2482 = vmatpush3.bf16.msra.mxu1 %v2809_v49 }
 0x184   :  { %1331 = vmatpush1.bf16.msra.mxu0 %v2733_v52 }
 0x185   :  { %1332 = vmatprep.subr.bf16.mxu0 %v2740_v53  ;;  %v2810_v53 = vld [vmem:[#allocation14 + $0x48] sm:$0xff]  }
 0x186   :  { %2483 = vmatprep.subr.bf16.mxu1 %v2810_v53 }
 0x188   :  { %1333 = vmatpush1.bf16.msra.mxu0 %v2738_v55 }
 0x189   :  { %1334 = vmatprep.subr.bf16.mxu0 %v2745_v56  ;;  %v2811_v56 = vld [vmem:[#allocation14 + $0x8] sm:$0xff]  }
 0x18a   :  { %2484 = vmatpush3.bf16.msra.mxu1 %v2811_v56 }
 0x18c   :  { %1335 = vmatpush1.bf16.msra.mxu0 %v2743_v57 }
 0x18d   :  { %1336 = vmatprep.subr.bf16.mxu0 %v2750_v58 }
 0x190   :  { %1337 = vmatpush1.bf16.msra.mxu0 %v2748_v59  ;;  %v2812_v59 = vld [vmem:[#allocation14 + $0x50] sm:$0xff]  }
 0x191   :  { %1347 = vmatprep.subr.bf16.mxu0 %v2757_v60  ;;  %v2813_v60 = vld [vmem:[#allocation14 + $0x10] sm:$0xff]   ;;  %2485 = vmatprep.subr.bf16.mxu1 %v2812_v59 }
 0x192   :  { %2486 = vmatpush3.bf16.msra.mxu1 %v2813_v60 }
 0x193   :  { %1339 = vmatmul.mubr.bf16.vlgmr.msra.gmra.mrb[0].mxu0 %v3508_v14  ;;  %v2786_v14 = vld [vmem:[#allocation5 + $0x3dc] ss:$12 sps:$4 sm:$0xff]  }
 0x194   :  { %1348 = vmatpush1.bf16.msra.mxu0 %v2755_v61  ;;  %1379 = vmatprep.mubr.bf16.mxu0 %v3511_v35 }
 0x195   :  { %1349 = vmatprep.subr.bf16.mxu0 %v2760_v62 }
 0x198   :  { %1350 = vmatpush1.bf16.msra.mxu0 %v2758_v63 }
 0x199   :  { %1351 = vmatprep.subr.bf16.mxu0 %v2764_v0  ;;  %v2814_v0 = vld [vmem:[#allocation14 + $0x58] sm:$0xff]  }
 0x19a   :  { %2487 = vmatprep.subr.bf16.mxu1 %v2814_v0 }
 0x19c   :  { %1352 = vmatpush1.bf16.msra.mxu0 %v2762_v1 }
 0x19d   :  { %1353 = vmatprep.subr.bf16.mxu0 %v2768_v2  ;;  %v2815_v2 = vld [vmem:[#allocation14 + $0x18] sm:$0xff]  }
 0x19e   :  { %2488 = vmatpush3.bf16.msra.mxu1 %v2815_v2 }
 0x1a0   :  { %1354 = vmatpush1.bf16.msra.mxu0 %v2766_v3 }
 0x1a1   :  { %1355 = vmatprep.subr.bf16.mxu0 %v2771_v4  ;;  %v2816_v4 = vld [vmem:[#allocation14 + $0x60] sm:$0xff]  }
 0x1a2   :  { %2489 = vmatprep.subr.bf16.mxu1 %v2816_v4 }
 0x1a4   :  { %1356 = vmatpush1.bf16.msra.mxu0 %v2769_v5  ;;  %v2817_v5 = vld [vmem:[#allocation14 + $0x20] sm:$0xff]  }
 0x1a5   :  { %1357 = vmatprep.subr.bf16.mxu0 %v2774_v6  ;;  %2490 = vmatpush3.bf16.msra.mxu1 %v2817_v5  ;;  %v2818_v6 = vld [vmem:[#allocation14 + $0x68] sm:$0xff]  }
 0x1a6   :  { %2491 = vmatprep.subr.bf16.mxu1 %v2818_v6 }
 0x1a8   :  { %1358 = vmatpush1.bf16.msra.mxu0 %v2772_v7  ;;  %v2819_v7 = vld [vmem:[#allocation14 + $0x28] sm:$0xff]  }
 0x1a9   :  { %1359 = vmatprep.subr.bf16.mxu0 %v2777_v8  ;;  %2492 = vmatpush3.bf16.msra.mxu1 %v2819_v7  ;;  %v2820_v8 = vld [vmem:[#allocation14 + $0x70] sm:$0xff]  }
 0x1aa   :  { %2493 = vmatprep.subr.bf16.mxu1 %v2820_v8 }
 0x1ac   :  { %1360 = vmatpush1.bf16.msra.mxu0 %v2775_v9  ;;  %v2821_v9 = vld [vmem:[#allocation14 + $0x30] sm:$0xff]  }
 0x1ad   :  { %1361 = vmatprep.subr.bf16.mxu0 %v2780_v10  ;;  %v2822_v10 = vld [vmem:[#allocation14 + $0x78] sm:$0xff]   ;;  %2494 = vmatpush3.bf16.msra.mxu1 %v2821_v9 }
 0x1ae   :  { %2495 = vmatprep.subr.bf16.mxu1 %v2822_v10 }
 0x1b0   :  { %1362 = vmatpush1.bf16.msra.mxu0 %v2778_v11  ;;  %v2823_v11 = vld [vmem:[#allocation14 + $0x38] sm:$0xff]  }
 0x1b1   :  { %1363 = vmatprep.subr.bf16.mxu0 %v2783_v12  ;;  %2496 = vmatpush3.bf16.msra.mxu1 %v2823_v11 }
 0x1b2   :  { %2527 = vmatprep.subr.bf16.mxu1 %v3237_v51 }
 0x1b4   :  { %1364 = vmatpush1.bf16.msra.mxu0 %v2781_v13  ;;  %v3543_v13 = vsel %vm233_vm2, 1.0, %v3237_v51 }
 0x1b5   :  { %1365 = vmatprep.subr.bf16.mxu0 %v2786_v14 }
 0x1b8   :  { %1366 = vmatpush1.bf16.msra.mxu0 %v2784_v15 }
 0x1b9   :  { %1367 = vmatprep.subr.bf16.mxu0 %v2789_v16 }
 0x1bc   :  { %1368 = vmatpush1.bf16.msra.mxu0 %v2787_v17 }
 0x1bd   :  { %1369 = vmatprep.subr.bf16.mxu0 %v2792_v18 }
 0x1c0   :  { %1370 = vmatpush1.bf16.msra.mxu0 %v2790_v19  ;;  %v3549_v19 = vsub.s32 0, %v3529_v37 }
 0x1c1   :  { %1371 = vmatprep.subr.bf16.mxu0 %v2795_v20 }
 0x1c4   :  { %1372 = vmatpush1.bf16.msra.mxu0 %v2793_v21 }
 0x1c5   :  { %1373 = vmatprep.subr.bf16.mxu0 %v2798_v22  ;;  %v3552_v22 = vsub.s32 1, %v3529_v37 }
 0x1c8   :  { %1374 = vmatpush1.bf16.msra.mxu0 %v2796_v23  ;;  %v441_v23 = vrot.slane %v3534_v39, %v3549_v19 }
 0x1c9   :  { %1375 = vmatprep.subr.bf16.mxu0 %v2801_v24 }
 0x1cc   :  { %1376 = vmatpush1.bf16.msra.mxu0 %v2799_v25 }
 0x1cd   :  { %1377 = vmatprep.subr.bf16.mxu0 %v2804_v26  ;;  %v445_v26 = vrot.slane %v3534_v39, %v3552_v22 }
 0x1d0   :  { %1378 = vmatpush1.bf16.msra.mxu0 %v2802_v27 }
 0x1d1   :  { %1388 = vmatprep.subr.bf16.mxu0 %v2807_v28 }
 0x1d3   :  { %1380 = vmatmul.mubr.bf16.vlgmr.msra.gmra.mrb[0].mxu0 %v3514_v47 }
 0x1d4   :  { %1389 = vmatpush1.bf16.msra.mxu0 %v2805_v29  ;;  %1420 = vmatprep.mubr.bf16.mxu0 %v3239_v30 }
 0x1df   :  { %2377 = vmatmul.mubr.msk.bf16.vlgmr.msra.gmra.mrb[0].mxu0 %vm1261_vm1, %v3520_v54 }
 0x209   :  { %v2429_v31 = vpop.f32.mrb[0].mxu1 }
 0x20a   :  { %v2430_v32 = vpop.f32.mrb[1].mxu1 }
 0x20b   :  { %v2431_v33 = vadd.f32 %v2430_v32, %v2429_v31  ;;  %v2432_v34 = vpop.f32.mrb[2].mxu1 }
 0x20c   :  { %v2433_v35 = vpop.f32.mrb[3].mxu1 }
 0x20d   :  { %v1464_v41 = vadd.f32 %v2431_v33, %v449_v40 }
 0x229   :  { %v2451_v42 = vpop.f32.mrb[4].mxu1 }
 0x22a   :  { %v2452_v43 = vpop.f32.mrb[5].mxu1 }
 0x22b   :  { %v2453_v44 = vadd.f32 %v2452_v43, %v2451_v42  ;;  %v2454_v45 = vpop.f32.mrb[6].mxu1 }
 0x22c   :  { %v2455_v46 = vpop.f32.mrb[7].mxu1 }
 0x22d   :  { %v1504_v47 = vadd.f32 %v2453_v44, %v1464_v41 }
 0x249   :  { %v2473_v50 = vpop.f32.mrb[8].mxu1 }
 0x24a   :  { %v2474_v52 = vpop.f32.mrb[9].mxu1 }
 0x24b   :  { %v2475_v54 = vadd.f32 %v2474_v52, %v2473_v50  ;;  %v2476_v55 = vpop.f32.mrb[10].mxu1 }
 0x24c   :  { %v2477_v57 = vpop.f32.mrb[11].mxu1 }
 0x24d   :  { %v1544_v58 = vadd.f32 %v2475_v54, %v1504_v47 }
 0x251   :  { %v1583_v61 = vpop.f32.mrb[12].mxu1 }
 0x252   :  { %v1584_v62 = vadd.f32 %v1583_v61, %v1544_v58  ;;  %v2525_v63 = vpop.f32.mrb[13].mxu1 }
 0x253   :  { %v1586_v1 = vpop.f32.mrb[14].mxu1 }
 0x254   :  { %v2526_v3 = vpop.f32.mrb[15].mxu1  ;;  %v3540_v12 = vmax.f32 %v1584_v62, 0.0 }
 0x256   :  { %v1594_v14 = vmul.f32 %v3543_v13, %v3540_v12 }
 0x258   :  { %v1607_v15 = vrot.slane %v1594_v14, 4  ;;  %v1618_v16 = vmul.f32 %v1594_v14, %v3540_v12 }
 0x25a   :  { %v1608_v17 = vadd.f32 %v1607_v15, %v1594_v14  ;;  %v1631_v18 = vrot.slane %v1618_v16, 4 }
 0x25c   :  { %v1609_v20 = vrot.slane %v1608_v17, 2  ;;  %v1632_v21 = vadd.f32 %v1631_v18, %v1618_v16 }
 0x25e   :  { %v1610_v24 = vadd.f32 %v1609_v20, %v1608_v17  ;;  %v1633_v25 = vrot.slane %v1632_v21, 2 }
 0x260   :  { %v1611_v30 = vrot.slane %v1610_v24, 1  ;;  %v1634_v31 = vadd.f32 %v1633_v25, %v1632_v21 }
 0x262   :  { %v1612_v41 = vadd.f32 %v1611_v30, %v1610_v24  ;;  %v1635_v42 = vrot.slane %v1634_v31, 1 }
 0x264   :  { %v1615_v49 = vmul.f32 0.25, %v1612_v41  ;;  %v1636_v50 = vadd.f32 %v1635_v42, %v1634_v31 }
 0x266   :  { %v1639_v60 = vmul.f32 0.25, %v1636_v50  ;;  %v1642_v61 = vmul.f32 %v1615_v49, %v1615_v49  ;;  %v1681_v50 = vld [vmem:[#allocation10] sm:$0x7] }
 0x268   :  { %v1645_v6 = vsub.f32 %v1639_v60, %v1642_v61  ;;  %v1712_v61 = vld [vmem:[#allocation11 + $0x8] sm:$0xff] }
 0x26a   :  { %v1649_v17 = vadd.f32 1e-05, %v1645_v6 }
 0x26c   :  { %2840 = vrsqrt.f32 %v1649_v17  ;;  %v2831_v17 = vld [vmem:[#allocation14 + $0xb8] sm:$0xff]  }
 0x276   :  { %v2841_v30 = vpop.eup %2840 }
 0x2b2   :  { %v1422_v27 = vpop.f32.mrb[0].mxu0 }
 0x2b3   :  { %v2567_v28 = vadd.f32 %v1422_v27, %v441_v23  ;;  %v1424_v29 = vpop.f32.mrb[1].mxu0  ;;  %v3240_v27 = vmov 1966171168  }
 0x2b4   :  { %v2568_v32 = vadd.f32 %v1424_v29, %v445_v26  ;;  %v1426_v33 = vpop.f32.mrb[2].mxu0 }
 0x2b5   :  { %v3558_v34 = vmax.f32 %v2567_v28, 0.0  ;;  %v1427_v35 = vpop.f32.mrb[3].mxu0  ;;  %v1658_v28 = vunpack.c.l.s4 %v3240_v27  ;;  %v2837_v27 = vld [vmem:[#allocation23 + $0x28] sm:$0xff]  }
 0x2b6   :  { %v3560_v36 = vmax.f32 %v2568_v32, 0.0 }
 0x2b7   :  { %v1592_v40 = vmul.f32 %v3543_v13, %v3558_v34  ;;  %v1659_v29 = vunpack.c.0.s8 %v1658_v28  ;;  %v2838_v28 = vld [vmem:[#allocation23 + $0x30] sm:$0xff]  }
 0x2b8   :  { %v1593_v39 = vmul.f32 %v3543_v13, %v3560_v36 }
 0x2b9   :  { %v1595_v43 = vrot.slane %v1592_v40, 4  ;;  %v1616_v44 = vmul.f32 %v1592_v40, %v3558_v34  ;;  %v1662_v32 = vsub.s32 %v1659_v29, %v3529_v37  ;;  %v2839_v29 = vld [vmem:[#allocation23 + $0x38] sm:$0xff]  }
 0x2ba   :  { %v1601_v45 = vrot.slane %v1593_v39, 4  ;;  %v1617_v46 = vmul.f32 %v1593_v39, %v3560_v36 }
 0x2bb   :  { %v1596_v47 = vadd.f32 %v1595_v43, %v1592_v40  ;;  %v1619_v48 = vrot.slane %v1616_v44, 4  ;;  %v1699_v41 = vrot.slane %v1615_v49, %v1662_v32 }
 0x2bc   :  { %v1602_v52 = vadd.f32 %v1601_v45, %v1593_v39  ;;  %v1625_v53 = vrot.slane %v1617_v46, 4  ;;  %v1670_v39 = vrot.slane %v2841_v30, %v1662_v32  ;;  %v1646_v45 = vld [vmem:[#allocation8] sm:$0x7] }
 0x2bd   :  { %v1597_v54 = vrot.slane %v1596_v47, 2  ;;  %v1620_v55 = vadd.f32 %v1619_v48, %v1616_v44 }
 0x2be   :  { %v1603_v56 = vrot.slane %v1602_v52, 2  ;;  %v1626_v57 = vadd.f32 %v1625_v53, %v1617_v46 }
 0x2bf   :  { %v1598_v58 = vadd.f32 %v1597_v54, %v1596_v47  ;;  %v1621_v59 = vrot.slane %v1620_v55, 2 }
 0x2c0   :  { %v1604_v62 = vadd.f32 %v1603_v56, %v1602_v52  ;;  %v1627_v63 = vrot.slane %v1626_v57, 2 }
 0x2c1   :  { %v1599_v0 = vrot.slane %v1598_v58, 1  ;;  %v1622_v1 = vadd.f32 %v1621_v59, %v1620_v55 }
 0x2c2   :  { %v1605_v2 = vrot.slane %v1604_v62, 1  ;;  %v1628_v3 = vadd.f32 %v1627_v63, %v1626_v57 }
 0x2c3   :  { %v1600_v4 = vadd.f32 %v1599_v0, %v1598_v58  ;;  %v1623_v5 = vrot.slane %v1622_v1, 1 }
 0x2c4   :  { %v1606_v7 = vadd.f32 %v1605_v2, %v1604_v62  ;;  %v1629_v8 = vrot.slane %v1628_v3, 1  ;;  %v1711_v62 = vld [vmem:[#allocation11] sm:$0xff] }
 0x2c5   :  { %v1613_v9 = vmul.f32 0.25, %v1600_v4  ;;  %v1624_v10 = vadd.f32 %v1623_v5, %v1622_v1  ;;  %v1756_v2 = vld [vmem:[#allocation13 + $0x8] sm:$0xff] }
 0x2c6   :  { %v1614_v11 = vmul.f32 0.25, %v1606_v7  ;;  %v1630_v14 = vadd.f32 %v1629_v8, %v1628_v3  ;;  %v1755_v3 = vld [vmem:[#allocation13] sm:$0xff]  ;;  %v2827_v8 = vld [vmem:[#allocation14 + $0x98] sm:$0xff]  }
 0x2c7   :  { %v1637_v15 = vmul.f32 0.25, %v1624_v10  ;;  %v1640_v16 = vmul.f32 %v1613_v9, %v1613_v9  ;;  %v2829_v10 = vld [vmem:[#allocation14 + $0xa8] sm:$0xff]  }
 0x2c8   :  { %v1638_v18 = vmul.f32 0.25, %v1630_v14  ;;  %v1641_v20 = vmul.f32 %v1614_v11, %v1614_v11  ;;  %v1685_v21 = vcombine.low %v1613_v9, %v1614_v11  ;;  %v2828_v9 = vld [vmem:[#allocation14 + $0xa0] sm:$0xff]   ;;  %v2830_v14 = vld [vmem:[#allocation14 + $0xb0] sm:$0xff]  }
 0x2c9   :  { %v1643_v23 = vsub.f32 %v1637_v15, %v1640_v16  ;;  %v1713_v11 = vld [vmem:[#allocation11 + $0x10] sm:$0xff]  ;;  %v1757_v16 = vld [vmem:[#allocation13 + $0x10] sm:$0xff] }
 0x2ca   :  { %v1644_v24 = vsub.f32 %v1638_v18, %v1641_v20  ;;  %v1692_v40 = vrot.slane %v1685_v21, %v1662_v32  ;;  %v2832_v21 = vld [vmem:[#allocation23] sm:$0xff]  }
 0x2cb   :  { %v1647_v25 = vadd.f32 1e-05, %v1643_v23  ;;  %v2833_v23 = vld [vmem:[#allocation23 + $0x8] sm:$0xff]  }
 0x2cc   :  { %v1648_v26 = vadd.f32 1e-05, %v1644_v24  ;;  %v1700_v44 = vcombine.low %v1692_v40, %v1699_v41  ;;  %v2834_v24 = vld [vmem:[#allocation23 + $0x10] sm:$0xff]   ;;  %v2379_v40 = vld [vmem:[#allocation16] ss:$0 sm:$0xff] }
 0x2cd   :  { %2842 = vrsqrt.f32 %v1647_v25  ;;  %v2835_v25 = vld [vmem:[#allocation23 + $0x18] sm:$0xff]  }
 0x2ce   :  { %2844 = vrsqrt.f32 %v1648_v26  ;;  %v1707_v48 = vrot.slane %v1700_v44, %v1662_v32  ;;  %v2836_v26 = vld [vmem:[#allocation23 + $0x20] sm:$0xff]  }
 0x2d7   :  { %v2843_v31 = vpop.eup %2842 }
 0x2d8   :  { %v2845_v33 = vpop.eup %2844 }
 0x2d9   :  { %v1656_v35 = vcombine.low %v2843_v31, %v2845_v33 }
 0x2db   :  { %v1663_v42 = vrot.slane %v1656_v35, %v1662_v32 }
 0x2dd   :  { %v1671_v43 = vcombine.low %v1663_v42, %v1670_v39 }
 0x2df   :  { %v1678_v46 = vrot.slane %v1671_v43, %v1662_v32 }
 0x2e1   :  { %v1680_v47 = vmul.f32 %v1678_v46, %v1646_v45 }
 0x2e3   :  { %v1709_v52 = vmul.f32 %v1707_v48, %v1680_v47  ;;  %v1722_v53 = vrot.slane %v1680_v47, %v3552_v22  ;;  %v1718_v54 = vrot.slane %v1680_v47, %v3549_v19  ;;  %v1726_v37 = vrot.slane %v1680_v47, %v3532_v38 }
 0x2e5   :  { %v1710_v55 = vsub.f32 %v1681_v50, %v1709_v52  ;;  %v1731_v56 = vmul.f32 %v1722_v53, %v3560_v36  ;;  %v1730_v49 = vmul.f32 %v1718_v54, %v3558_v34  ;;  %v1732_v59 = vmul.f32 %v1726_v37, %v3540_v12  ;;  %v2825_v12 = vld [vmem:[#allocation14 + $0x88] sm:$0xff]  }
 0x2e7   :  { %v1741_v57 = vrot.slane %v1710_v55, %v3552_v22  ;;  %v1737_v58 = vrot.slane %v1710_v55, %v3549_v19  ;;  %v1745_v60 = vrot.slane %v1710_v55, %v3532_v38  ;;  %v2824_v22 = vld [vmem:[#allocation14 + $0x80] sm:$0xff]   ;;  %v2826_v38 = vld [vmem:[#allocation14 + $0x90] sm:$0xff]  }
 0x2e9   :  { %v1750_v63 = vadd.f32 %v1741_v57, %v1731_v56  ;;  %v1749_v0 = vadd.f32 %v1737_v58, %v1730_v49  ;;  %v1751_v1 = vadd.f32 %v1745_v60, %v1732_v59 }
 0x2eb   :  { %v1753_v4 = vmul.f32 %v1750_v63, %v1712_v61  ;;  %v1752_v5 = vmul.f32 %v1749_v0, %v1711_v62  ;;  %v1754_v15 = vmul.f32 %v1751_v1, %v1713_v11 }
 0x2ed   :  { %v1759_v36 = vadd.f32 %v1756_v2, %v1753_v4  ;;  %v1758_v6 = vadd.f32 %v1755_v3, %v1752_v5  ;;  %v1760_v18 = vadd.f32 %v1757_v16, %v1754_v15  ;;  %v2066_v3 = vld [vmem:[#allocation19] sm:$0x1] }
 0x2ef   :  { %v1762_v34 = vpack.c.bf16 %v1759_v36, %v1759_v36  ;;  %v1761_v7 = vpack.c.bf16 %v1758_v6, %v1758_v6  ;;  %v1763_v20 = vpack.c.bf16 %v1760_v18, %v1760_v18 }
 0x2f1   :  { %1995 = vmatprep.mubr.bf16.mxu1 %v1762_v34 }
 0x2f2   :  { %1996 = vmatmul.mubr.bf16.vlgmr.msra.gmra.mrb[16].mxu1 %v1761_v7  ;;  %v2069_v7 = vld [vmem:[#allocation20] sm:$0xff] }
 0x2f3   :  { %2528 = vmatpush3.bf16.msra.mxu1 %v2824_v22  ;;  %2543 = vmatprep.mubr.msk.bf16.mxu1 %vm3238_vm0, %v3237_v51 }
 0x2f4   :  { %2529 = vmatprep.subr.bf16.mxu1 %v3237_v51 }
 0x2f7   :  { %2530 = vmatpush3.bf16.msra.mxu1 %v2825_v12  ;;  %v2085_v12 = vld [vmem:[#allocation22] sm:$0xff] }
 0x2f8   :  { %2531 = vmatprep.subr.bf16.mxu1 %v3237_v51 }
 0x2fb   :  { %2532 = vmatpush3.bf16.msra.mxu1 %v2826_v38 }
 0x2fc   :  { %2533 = vmatprep.subr.bf16.mxu1 %v3237_v51 }
 0x2ff   :  { %2534 = vmatpush3.bf16.msra.mxu1 %v2827_v8 }
 0x300   :  { %2535 = vmatprep.subr.bf16.mxu1 %v3237_v51 }
 0x303   :  { %2536 = vmatpush3.bf16.msra.mxu1 %v2828_v9 }
 0x304   :  { %2537 = vmatprep.subr.bf16.mxu1 %v3237_v51 }
 0x307   :  { %2538 = vmatpush3.bf16.msra.mxu1 %v2829_v10  ;;  %v2404_v10 = vld [vmem:[#allocation25] ss:$0 sm:$0xff] }
 0x308   :  { %2539 = vmatprep.subr.bf16.mxu1 %v3237_v51 }
 0x30b   :  { %2540 = vmatpush3.bf16.msra.mxu1 %v2830_v14 }
 0x30c   :  { %2541 = vmatprep.subr.bf16.mxu1 %v3237_v51 }
 0x30f   :  { %2542 = vmatpush3.bf16.msra.mxu1 %v2831_v17 }
 0x310   :  { %2547 = vmatprep.subr.bf16.mxu1 %v3237_v51 }
 0x312   :  { %2544 = vmatmul.mubr.bf16.vlgmr.msra.gmra.mrb[20].mxu1 %v1763_v20 }
 0x313   :  { %2563 = vmatprep.mubr.msk.bf16.mxu1 %vm3238_vm0, %v3237_v51  ;;  %2548 = vmatpush3.bf16.msra.mxu1 %v2832_v21 }
 0x314   :  { %2549 = vmatprep.subr.bf16.mxu1 %v3237_v51 }
 0x317   :  { %2550 = vmatpush3.bf16.msra.mxu1 %v2833_v23 }
 0x318   :  { %2551 = vmatprep.subr.bf16.mxu1 %v3237_v51 }
 0x31b   :  { %2552 = vmatpush3.bf16.msra.mxu1 %v2834_v24 }
 0x31c   :  { %2553 = vmatprep.subr.bf16.mxu1 %v3237_v51 }
 0x31f   :  { %2554 = vmatpush3.bf16.msra.mxu1 %v2835_v25 }
 0x320   :  { %2555 = vmatprep.subr.bf16.mxu1 %v3237_v51 }
 0x323   :  { %2556 = vmatpush3.bf16.msra.mxu1 %v2836_v26 }
 0x324   :  { %2557 = vmatprep.subr.bf16.mxu1 %v3237_v51 }
 0x327   :  { %2558 = vmatpush3.bf16.msra.mxu1 %v2837_v27 }
 0x328   :  { %2559 = vmatprep.subr.bf16.mxu1 %v3237_v51 }
 0x32b   :  { %2560 = vmatpush3.bf16.msra.mxu1 %v2838_v28 }
 0x32c   :  { %2561 = vmatprep.subr.bf16.mxu1 %v3237_v51 }
 0x32f   :  { %2562 = vmatpush3.bf16.msra.mxu1 %v2839_v29 }
 0x3c5   :  { %v2497_v30 = vpop.f32.mrb[16].mxu1 }
 0x3c6   :  { %v2498_v31 = vpop.f32.mrb[17].mxu1 }
 0x3c7   :  { %v2499_v32 = vadd.f32 %v2498_v31, %v2497_v30  ;;  %v2500_v33 = vpop.f32.mrb[18].mxu1 }
 0x3c8   :  { %v2501_v35 = vpop.f32.mrb[19].mxu1 }
 0x3c9   :  { %v1998_v41 = vadd.f32 %v2499_v32, %v2379_v40 }
 0x3e5   :  { %v2037_v42 = vpop.f32.mrb[20].mxu1 }
 0x3e6   :  { %v2038_v39 = vadd.f32 %v2037_v42, %v1998_v41  ;;  %v2545_v43 = vpop.f32.mrb[21].mxu1 }
 0x3e7   :  { %v2040_v44 = vpop.f32.mrb[22].mxu1 }
 0x3e8   :  { %v2043_v45 = vmax.f32 %v2038_v39, 0.0  ;;  %v2546_v46 = vpop.f32.mrb[23].mxu1 }
 0x3ea   :  { %v2044_v47 = vmul.f32 %v3543_v13, %v2043_v45  ;;  %v2062_v13 = vld [vmem:[#allocation17] sm:$0x1] }
 0x3ec   :  { %v2045_v48 = vrot.slane %v2044_v47, 4  ;;  %v2052_v50 = vmul.f32 %v2044_v47, %v2043_v45 }
 0x3ee   :  { %v2046_v51 = vadd.f32 %v2045_v48, %v2044_v47  ;;  %v2053_v52 = vrot.slane %v2052_v50, 4 }
 0x3f0   :  { %v2047_v53 = vrot.slane %v2046_v51, 2  ;;  %v2054_v54 = vadd.f32 %v2053_v52, %v2052_v50 }
 0x3f2   :  { %v2048_v37 = vadd.f32 %v2047_v53, %v2046_v51  ;;  %v2055_v55 = vrot.slane %v2054_v54, 2 }
 0x3f4   :  { %v2049_v56 = vrot.slane %v2048_v37, 1  ;;  %v2056_v49 = vadd.f32 %v2055_v55, %v2054_v54 }
 0x3f6   :  { %v2050_v57 = vadd.f32 %v2049_v56, %v2048_v37  ;;  %v2057_v58 = vrot.slane %v2056_v49, 1 }
 0x3f8   :  { %v2051_v59 = vmul.f32 0.25, %v2050_v57  ;;  %v2058_v60 = vadd.f32 %v2057_v58, %v2056_v49 }
 0x3fa   :  { %v2059_v61 = vmul.f32 0.25, %v2058_v60  ;;  %v2060_v62 = vmul.f32 %v2051_v59, %v2051_v59 }
 0x3fc   :  { %v2061_v63 = vsub.f32 %v2059_v61, %v2060_v62 }
 0x3fe   :  { %v2063_v0 = vadd.f32 1e-05, %v2061_v63 }
 0x400   :  { %2846 = vrsqrt.f32 %v2063_v0 }
 0x40a   :  { %v2847_v1 = vpop.eup %2846 }
 0x40b   :  { %v2065_v2 = vmul.f32 %v2847_v1, %v2062_v13 }
 0x40d   :  { %v2067_v4 = vmul.f32 %v2065_v2, %v2051_v59  ;;  %v2074_v5 = vrot.slane %v2065_v2, %v3549_v19 }
 0x40f   :  { %v2068_v36 = vsub.f32 %v2066_v3, %v2067_v4  ;;  %v2076_v6 = vmul.f32 %v2074_v5, %v2043_v45 }
 0x411   :  { %v2081_v34 = vrot.slane %v2068_v36, %v3549_v19 }
 0x413   :  { %v2083_v22 = vadd.f32 %v2081_v34, %v2076_v6 }
 0x415   :  { %v2084_v38 = vmul.f32 %v2083_v22, %v2069_v7 }
 0x417   :  { %v2086_v8 = vadd.f32 %v2085_v12, %v2084_v38 }
 0x419   :  { %v2087_v9 = vpack.c.bf16 %v2086_v8, %v2086_v8 }
 0x41b   :  { %2564 = vmatmul.mubr.bf16.vlgmr.msra.gmra.mrb[24].mxu1 %v2087_v9 }
 0x4ee   :  { %v2193_v11 = vpop.f32.mrb[24].mxu1 }
 0x4ef   :  { %v2194_v14 = vadd.f32 %v2404_v10, %v2193_v11  ;;  %v2565_v15 = vpop.f32.mrb[25].mxu1 }
 0x4f0   :  { %v2196_v16 = vpop.f32.mrb[26].mxu1 }
 0x4f1   :  { %2199 = vst [vmem:[#allocation26] sm:$0xff] %v2194_v14  ;;  %v2566_v17 = vpop.f32.mrb[27].mxu1 }
 0x4f2   :  { %3189 = shalt.err (!%p3186_p12)
}
 0x4f3   :  { %s3630_s16 = sld [smem:[#allocation36_spill]] }
 0x4f9   :  { %s3190_s29 = scalar_lea.hbm %s3630_s16, 128 }
 0x4fa   :  { %p3191_p13 = scmp.ne.s32.totalorder %s3630_s16, %s3190_s29  ;;  %p3194_p0 = scmp.lt.u32.totalorder %s3190_s29, %s3630_s16 }
 0x4fc   :  { %p3196_p1 = pnand %p3194_p0, %p3191_p13 }
 0x4fe   :  { %3199 = shalt.err (!%p3196_p1)
}
 0x4ff   :  { %2209 = dma.vmem_to_hbm [thread:$0]  %s2207_s11, 128, %s3630_s16, [#allocation4]  }
 0x500   :  { %3216 = dma.done.wait [#allocation4], 128  }
 0x501   :  { %3217 = vsyncadd [#allocation4], 4294967168 }
 0x502   :  { %2213 = vsyncpa [#allocation3], 1 }
 0x503   :  { %2214 = vsyncpa [#allocation6], 1 }
 0x504   :  { %2215 = vsyncpa [#allocation9], 1 }
 0x505   :  { %2216 = vsyncpa [#allocation12], 1 }
 0x506   :  { %2217 = vsyncpa [#allocation15], 1 }
 0x507   :  { %2218 = vsyncpa [#allocation18], 1 }
 0x508   :  { %2219 = vsyncpa [#allocation21], 1 }
 0x509   :  { %2220 = vsyncpa [#allocation24], 1 }
 0x50a   :  { %2221 = vsyncpa [#allocation4], 1 }

</bundles_post_ra>
